<compile_context>
chip_gen: v5e
topology: v5e:2x2
jax: 0.10.0
libtpu: 0.0.40
codegen_flags: <defaults>
</compile_context>

<pallas_src>
import functools
import math

import jax
import jax.numpy as jnp
from jax.experimental import pallas as pl
from jax.experimental.pallas import tpu as pltpu


_COMPUTE_DTYPE = jnp.bfloat16   # MXU-native operand / activation storage dtype
_LN_EPS = 1e-5


# -----------------------------------------------------------------------------
# VMEM-aware tiling helpers
# -----------------------------------------------------------------------------
def _vmem_capacity_bytes():
    try:
        cap = int(pltpu.get_tpu_info().vmem_capacity_bytes)
        if cap >= (16 << 20):
            return cap
    except Exception:
        pass
    return 64 << 20          # conservative fallback (v7x per-TC VMEM)


_VMEM_BUDGET = _vmem_capacity_bytes()
_VMEM_LIMIT = int(_VMEM_BUDGET * 0.75)


def _pick_tile(m, row_bytes, fixed_bytes=0, preferred=512):
    """Largest row-tile that divides m, is a multiple of 8, keeps the
    double-buffered row blocks + fixed (weight) blocks under ~half of VMEM,
    and (when possible) yields >=2 grid blocks for the v7x megacore."""
    if m % 8 != 0:
        return m                              # single whole block (tiny/irregular M)
    budget = _VMEM_BUDGET // 2
    avail = max(budget - fixed_bytes, 16 * row_bytes)
    cap = min(preferred, m, max(8, avail // (2 * row_bytes)))
    if m >= 16:
        cap = min(cap, m // 2)                # aim for >= 2 grid blocks
    cap = max(8, int(cap) - int(cap) % 8)
    for t in range(cap, 7, -8):
        if m % t == 0:
            return t
    return m


def _pick_n_chunk(n, preferred=512):
    """Largest chunk of a feature axis that divides n, preferring 128 multiples."""
    for step in (128, 8):
        if n % step == 0:
            cap = min(preferred, n)
            cap -= cap % step
            for t in range(cap, step - 1, -step):
                if n % t == 0:
                    return t
    return n


_HAS_BUFFERED = hasattr(pl, "Buffered")


def _spec(block_shape, index_map, *, invariant=False):
    """BlockSpec; grid-invariant operands request single buffering (no point
    double-buffering a block whose index never changes)."""
    if invariant and _HAS_BUFFERED:
        try:
            return pl.BlockSpec(block_shape, index_map, pipeline_mode=pl.Buffered(1))
        except TypeError:
            pass
    return pl.BlockSpec(block_shape, index_map)


def _compiler_params(semantics):
    return pltpu.CompilerParams(dimension_semantics=semantics,
                                vmem_limit_bytes=_VMEM_LIMIT)


# -----------------------------------------------------------------------------
# Shared in-kernel pieces
# -----------------------------------------------------------------------------
def _attn_head(scale, causal, q_src, kv_src, wq, bq, wk, bk, wv, bv):
    """One head: projections + scaled dot-product attention. Returns (Sq, Dh) f32."""
    q = jnp.dot(q_src, wq, preferred_element_type=jnp.float32) + bq
    k = jnp.dot(kv_src, wk, preferred_element_type=jnp.float32) + bk
    v = jnp.dot(kv_src, wv, preferred_element_type=jnp.float32) + bv
    s = jax.lax.dot_general(q.astype(_COMPUTE_DTYPE), k.astype(_COMPUTE_DTYPE),
                            (((1,), (1,)), ((), ())),
                            preferred_element_type=jnp.float32) * scale
    if causal:
        sq, sk = s.shape
        row = jax.lax.broadcasted_iota(jnp.int32, (sq, sk), 0)
        col = jax.lax.broadcasted_iota(jnp.int32, (sq, sk), 1)
        s = jnp.where(col <= row, s, jnp.float32(-1e9))
    s = s - jnp.max(s, axis=-1, keepdims=True)
    p = jnp.exp(s)
    p = p * pl.reciprocal(jnp.sum(p, axis=-1, keepdims=True), approx=True)
    return jnp.dot(p.astype(_COMPUTE_DTYPE), v.astype(_COMPUTE_DTYPE),
                   preferred_element_type=jnp.float32)


def _residual_layernorm(y, g, beta, out_dtype):
    mean = jnp.mean(y, axis=-1, keepdims=True)
    var = jnp.mean(jnp.square(y - mean), axis=-1, keepdims=True)
    yn = (y - mean) * jax.lax.rsqrt(var + _LN_EPS)
    return (yn * g + beta).astype(out_dtype)


def _attn_epilogue(acc_ref, head_out, wo, residual, bo_ref, g_ref, beta_ref, o_ref):
    """Accumulate this head's output projection; finalize on the last head."""
    acc_ref[...] += jnp.dot(head_out.astype(_COMPUTE_DTYPE), wo,
                            preferred_element_type=jnp.float32)

    @pl.when(pl.program_id(1) == pl.num_programs(1) - 1)
    def _():
        y = acc_ref[...] + bo_ref[...] + residual.astype(jnp.float32)
        o_ref[...] = _residual_layernorm(y, g_ref[...], beta_ref[...], o_ref.dtype)


# -----------------------------------------------------------------------------
# Fused self-attention sub-layer: QKV proj -> attention -> out proj -> +res -> LN
# grid = (batch, heads); heads is a reduction axis with an f32 (S, D) accumulator.
# -----------------------------------------------------------------------------
def _self_attn_kernel(scale, x_ref, wq_ref, bq_ref, wk_ref, bk_ref, wv_ref, bv_ref,
                      wo_ref, bo_ref, g_ref, beta_ref, o_ref, acc_ref):
    @pl.when(pl.program_id(1) == 0)
    def _():
        acc_ref[...] = jnp.zeros_like(acc_ref)

    x = x_ref[...]                                   # (S, D) bf16
    head = _attn_head(scale, True, x, x,
                      wq_ref[0], bq_ref[0], wk_ref[0], bk_ref[0], wv_ref[0], bv_ref[0])
    _attn_epilogue(acc_ref, head, wo_ref[0], x, bo_ref, g_ref, beta_ref, o_ref)


def self_attention_block(x2d, sa, g, beta, *, batch, seq, heads):
    M, D = x2d.shape
    dh = D // heads
    kern = functools.partial(_self_attn_kernel, 1.0 / math.sqrt(dh))
    return pl.pallas_call(
        kern,
        out_shape=jax.ShapeDtypeStruct((M, D), _COMPUTE_DTYPE),
        grid=(batch, heads),
        in_specs=[
            pl.BlockSpec((seq, D), lambda b, h: (b, 0)),          # x (resident over h)
            pl.BlockSpec((1, D, dh), lambda b, h: (h, 0, 0)),     # wq (head-major)
            pl.BlockSpec((1, 1, dh), lambda b, h: (h, 0, 0)),     # bq
            pl.BlockSpec((1, D, dh), lambda b, h: (h, 0, 0)),     # wk
            pl.BlockSpec((1, 1, dh), lambda b, h: (h, 0, 0)),     # bk
            pl.BlockSpec((1, D, dh), lambda b, h: (h, 0, 0)),     # wv
            pl.BlockSpec((1, 1, dh), lambda b, h: (h, 0, 0)),     # bv
            pl.BlockSpec((1, dh, D), lambda b, h: (h, 0, 0)),     # wo (head-major)
            _spec((1, D), lambda b, h: (0, 0), invariant=True),   # bo
            _spec((1, D), lambda b, h: (0, 0), invariant=True),   # ln gamma
            _spec((1, D), lambda b, h: (0, 0), invariant=True),   # ln beta
        ],
        out_specs=pl.BlockSpec((seq, D), lambda b, h: (b, 0)),
        scratch_shapes=[pltpu.VMEM((seq, D), jnp.float32)],
        compiler_params=_compiler_params(("parallel", "arbitrary")),
    )(x2d, sa["wq"], sa["bq"], sa["wk"], sa["bk"], sa["wv"], sa["bv"],
      sa["wo"], sa["bo"], g, beta)


# -----------------------------------------------------------------------------
# Fused cross-attention sub-layer (K/V from memory; mask is all-ones -> none)
# -----------------------------------------------------------------------------
def _cross_attn_kernel(scale, x_ref, mem_ref, wq_ref, bq_ref, wk_ref, bk_ref,
                       wv_ref, bv_ref, wo_ref, bo_ref, g_ref, beta_ref, o_ref, acc_ref):
    @pl.when(pl.program_id(1) == 0)
    def _():
        acc_ref[...] = jnp.zeros_like(acc_ref)

    x = x_ref[...]                                   # (S, D) bf16
    head = _attn_head(scale, False, x, mem_ref[...],
                      wq_ref[0], bq_ref[0], wk_ref[0], bk_ref[0], wv_ref[0], bv_ref[0])
    _attn_epilogue(acc_ref, head, wo_ref[0], x, bo_ref, g_ref, beta_ref, o_ref)


def cross_attention_block(x2d, mem2d, ca, g, beta, *, batch, seq, seq_kv, heads):
    M, D = x2d.shape
    dh = D // heads
    kern = functools.partial(_cross_attn_kernel, 1.0 / math.sqrt(dh))
    return pl.pallas_call(
        kern,
        out_shape=jax.ShapeDtypeStruct((M, D), _COMPUTE_DTYPE),
        grid=(batch, heads),
        in_specs=[
            pl.BlockSpec((seq, D), lambda b, h: (b, 0)),          # x (query + residual)
            pl.BlockSpec((seq_kv, D), lambda b, h: (b, 0)),       # memory (K/V source)
            pl.BlockSpec((1, D, dh), lambda b, h: (h, 0, 0)),     # wq
            pl.BlockSpec((1, 1, dh), lambda b, h: (h, 0, 0)),     # bq
            pl.BlockSpec((1, D, dh), lambda b, h: (h, 0, 0)),     # wk
            pl.BlockSpec((1, 1, dh), lambda b, h: (h, 0, 0)),     # bk
            pl.BlockSpec((1, D, dh), lambda b, h: (h, 0, 0)),     # wv
            pl.BlockSpec((1, 1, dh), lambda b, h: (h, 0, 0)),     # bv
            pl.BlockSpec((1, dh, D), lambda b, h: (h, 0, 0)),     # wo
            _spec((1, D), lambda b, h: (0, 0), invariant=True),   # bo
            _spec((1, D), lambda b, h: (0, 0), invariant=True),   # ln gamma
            _spec((1, D), lambda b, h: (0, 0), invariant=True),   # ln beta
        ],
        out_specs=pl.BlockSpec((seq, D), lambda b, h: (b, 0)),
        scratch_shapes=[pltpu.VMEM((seq, D), jnp.float32)],
        compiler_params=_compiler_params(("parallel", "arbitrary")),
    )(x2d, mem2d, ca["wq"], ca["bq"], ca["wk"], ca["bk"], ca["wv"], ca["bv"],
      ca["wo"], ca["bo"], g, beta)


# -----------------------------------------------------------------------------
# Fused FFN sub-layer: Linear -> ReLU -> Linear -> +residual -> LN
# grid = (M tiles, hidden chunks); hidden-chunk axis is a reduction so w1/w2 are
# never fully resident in VMEM.
# -----------------------------------------------------------------------------
def _ffn_block_kernel(x_ref, w1_ref, b1_ref, w2_ref, b2_ref, g_ref, beta_ref,
                      o_ref, acc_ref):
    @pl.when(pl.program_id(1) == 0)
    def _():
        acc_ref[...] = jnp.zeros_like(acc_ref)

    x = x_ref[...]                                   # (tm, D) bf16
    hid = jnp.dot(x, w1_ref[...], preferred_element_type=jnp.float32) + b1_ref[...]
    hid = jnp.maximum(hid, 0.0)                      # ReLU (per hidden chunk: exact)
    acc_ref[...] += jnp.dot(hid.astype(_COMPUTE_DTYPE), w2_ref[...],
                            preferred_element_type=jnp.float32)

    @pl.when(pl.program_id(1) == pl.num_programs(1) - 1)
    def _():
        y = acc_ref[...] + b2_ref[...] + x.astype(jnp.float32)
        o_ref[...] = _residual_layernorm(y, g_ref[...], beta_ref[...], o_ref.dtype)


def ffn_block(x2d, w1, b1, w2, b2, g, beta):
    M, D = x2d.shape
    hff = w1.shape[1]
    th = _pick_n_chunk(hff)
    row_bytes = D * (2 + 2 + 4)                      # x bf16 + out bf16 + f32 acc
    fixed = 2 * 2 * (D * th * 2)                     # w1/w2 chunks (bf16, double-buffered)
    tm = _pick_tile(M, row_bytes, fixed)
    return pl.pallas_call(
        _ffn_block_kernel,
        out_shape=jax.ShapeDtypeStruct((M, D), _COMPUTE_DTYPE),
        grid=(M // tm, hff // th),
        in_specs=[
            pl.BlockSpec((tm, D), lambda i, j: (i, 0)),
            pl.BlockSpec((D, th), lambda i, j: (0, j)),
            pl.BlockSpec((1, th), lambda i, j: (0, j)),
            pl.BlockSpec((th, D), lambda i, j: (j, 0)),
            _spec((1, D), lambda i, j: (0, 0), invariant=True),
            _spec((1, D), lambda i, j: (0, 0), invariant=True),
            _spec((1, D), lambda i, j: (0, 0), invariant=True),
        ],
        out_specs=pl.BlockSpec((tm, D), lambda i, j: (i, 0)),
        scratch_shapes=[pltpu.VMEM((tm, D), jnp.float32)],
        compiler_params=_compiler_params(("parallel", "arbitrary")),
    )(x2d, w1, b1, w2, b2, g, beta)


# -----------------------------------------------------------------------------
# Final Linear(D -> vocab) + softmax
# -----------------------------------------------------------------------------
def _linear_softmax_kernel(x_ref, w_ref, b_ref, o_ref):
    logits = jnp.dot(x_ref[...], w_ref[...],
                     preferred_element_type=jnp.float32) + b_ref[...]
    logits = logits - jnp.max(logits, axis=-1, keepdims=True)
    e = jnp.exp(logits)
    # Exact normalization so the final probability rows sum to 1 tightly.
    o_ref[...] = (e / jnp.sum(e, axis=-1, keepdims=True)).astype(o_ref.dtype)


def _linear_kernel(x_ref, w_ref, b_ref, o_ref):
    y = jnp.dot(x_ref[...], w_ref[...], preferred_element_type=jnp.float32) + b_ref[...]
    o_ref[...] = y.astype(o_ref.dtype)


def _softmax_rows_kernel(x_ref, o_ref):
    x = x_ref[...].astype(jnp.float32)
    x = x - jnp.max(x, axis=-1, keepdims=True)
    e = jnp.exp(x)
    o_ref[...] = (e / jnp.sum(e, axis=-1, keepdims=True)).astype(o_ref.dtype)


def vocab_softmax(x2d, w, b):
    M, D = x2d.shape
    V = w.shape[1]
    w_bytes = D * V * 2
    if w_bytes <= _VMEM_BUDGET // 4:
        # Fused path: (D, V) bf16 weight stays resident (single-buffered if supported).
        tm = _pick_tile(M, D * 2 + V * 4, w_bytes)
        return pl.pallas_call(
            _linear_softmax_kernel,
            out_shape=jax.ShapeDtypeStruct((M, V), jnp.float32),
            grid=(M // tm,),
            in_specs=[
                pl.BlockSpec((tm, D), lambda i: (i, 0)),
                _spec((D, V), lambda i: (0, 0), invariant=True),
                _spec((1, V), lambda i: (0, 0), invariant=True),
            ],
            out_specs=pl.BlockSpec((tm, V), lambda i: (i, 0)),
            compiler_params=_compiler_params(("parallel",)),
        )(x2d, w, b)

    # Large-vocab path: V-tiled logits kernel, then a row-softmax kernel.
    tv = _pick_n_chunk(V)
    tm = _pick_tile(M, D * 2 + tv * 2, 4 * D * tv)
    logits = pl.pallas_call(
        _linear_kernel,
        out_shape=jax.ShapeDtypeStruct((M, V), _COMPUTE_DTYPE),
        grid=(M // tm, V // tv),
        in_specs=[
            pl.BlockSpec((tm, D), lambda i, j: (i, 0)),
            pl.BlockSpec((D, tv), lambda i, j: (0, j)),
            pl.BlockSpec((1, tv), lambda i, j: (0, j)),
        ],
        out_specs=pl.BlockSpec((tm, tv), lambda i, j: (i, j)),
        compiler_params=_compiler_params(("parallel", "parallel")),
    )(x2d, w, b)
    tm2 = _pick_tile(M, V * (2 + 4))
    return pl.pallas_call(
        _softmax_rows_kernel,
        out_shape=jax.ShapeDtypeStruct((M, V), jnp.float32),
        grid=(M // tm2,),
        in_specs=[pl.BlockSpec((tm2, V), lambda i: (i, 0))],
        out_specs=pl.BlockSpec((tm2, V), lambda i: (i, 0)),
        compiler_params=_compiler_params(("parallel",)),
    )(logits)


# -----------------------------------------------------------------------------
# Glue (plain JAX): embedding gather, positional encoding
# -----------------------------------------------------------------------------
def positional_encoding(seq_len, d_model, base):
    pos = jnp.arange(seq_len, dtype=jnp.float32)[:, None]
    i = jnp.arange(d_model)[None, :]
    angle = pos / jnp.power(base, (2.0 * (i // 2).astype(jnp.float32)) / d_model)
    return jnp.where(i % 2 == 0, jnp.sin(angle), jnp.cos(angle)).astype(jnp.float32)


def decoder_forward(params, target_tokens, memory, *, num_heads, pe_base):
    B, S = target_tokens.shape
    D = params["embedding"].shape[1]
    Sm = memory.shape[1]

    # TransformerPass: token embedding + sinusoidal positional encoding.
    x = params["embedding"][target_tokens] + positional_encoding(S, D, pe_base)[None]
    x2d = x.reshape(B * S, D).astype(_COMPUTE_DTYPE)      # bf16 activations between kernels
    mem2d = memory.reshape(B * Sm, D).astype(_COMPUTE_DTYPE)

    for lp in params["layers"]:
        x2d = self_attention_block(x2d, lp["self_attn"], lp["ln1_g"], lp["ln1_b"],
                                   batch=B, seq=S, heads=num_heads)
        x2d = cross_attention_block(x2d, mem2d, lp["cross_attn"], lp["ln2_g"], lp["ln2_b"],
                                    batch=B, seq=S, seq_kv=Sm, heads=num_heads)
        x2d = ffn_block(x2d, lp["w1"], lp["b1"], lp["w2"], lp["b2"],
                        lp["ln3_g"], lp["ln3_b"])

    out = vocab_softmax(x2d, params["w_out"], params["b_out"])
    return out.reshape(B, S, -1)


# -----------------------------------------------------------------------------
# Deterministic parameter init (synthetic weights; bf16 + head-major layouts)
# -----------------------------------------------------------------------------
def init_params(key, *, layer_count, vocab, d_model, ffn_hidden, num_heads):
    assert d_model % num_heads == 0
    dh = d_model // num_heads

    def nrm(k, shape, scale=0.02):
        return (scale * jax.random.normal(k, shape)).astype(jnp.float32)

    def head_major_in(w):      # (D, D) column-split by head -> (H, D, Dh), bf16
        return jnp.transpose(w.reshape(d_model, num_heads, dh), (1, 0, 2)).astype(_COMPUTE_DTYPE)

    def head_major_out(w):     # (D, D) row-split by head -> (H, Dh, D), bf16
        return w.reshape(num_heads, dh, d_model).astype(_COMPUTE_DTYPE)

    def attn_params(keys):
        wq, wk, wv, wo = (nrm(next(keys), (d_model, d_model)) for _ in range(4))
        return {
            "wq": head_major_in(wq), "bq": jnp.zeros((num_heads, 1, dh), jnp.float32),
            "wk": head_major_in(wk), "bk": jnp.zeros((num_heads, 1, dh), jnp.float32),
            "wv": head_major_in(wv), "bv": jnp.zeros((num_heads, 1, dh), jnp.float32),
            "wo": head_major_out(wo), "bo": jnp.zeros((1, d_model), jnp.float32),
        }

    keys = iter(jax.random.split(key, 4 + layer_count * 16))
    params = {
        "embedding": nrm(next(keys), (vocab, d_model), 1.0),
        "w_out": nrm(next(keys), (d_model, vocab)).astype(_COMPUTE_DTYPE),
        "b_out": jnp.zeros((1, vocab), jnp.float32),
        "layers": [],
    }
    for _ in range(layer_count):
        params["layers"].append({
            "self_attn": attn_params(keys),
            "cross_attn": attn_params(keys),
            "w1": nrm(next(keys), (d_model, ffn_hidden)).astype(_COMPUTE_DTYPE),
            "b1": jnp.zeros((1, ffn_hidden), jnp.float32),
            "w2": nrm(next(keys), (ffn_hidden, d_model)).astype(_COMPUTE_DTYPE),
            "b2": jnp.zeros((1, d_model), jnp.float32),
            "ln1_g": jnp.ones((1, d_model), jnp.float32),
            "ln1_b": jnp.zeros((1, d_model), jnp.float32),
            "ln2_g": jnp.ones((1, d_model), jnp.float32),
            "ln2_b": jnp.zeros((1, d_model), jnp.float32),
            "ln3_g": jnp.ones((1, d_model), jnp.float32),
            "ln3_b": jnp.zeros((1, d_model), jnp.float32),
        })
    return params


if __name__ == "__main__":
    # Small, module-consistent shapes.
    LAYER_COUNT = 2
    VOCAB = 64
    D_MODEL = 32
    HEADS = 4
    FFN_HIDDEN = 64
    PE_BASE = 10000.0
    B, S = 2, 8          # target: (batch, seq) token ids
    S_MEM = 8            # memory: (batch, seq_mem, d_model)

    key = jax.random.PRNGKey(0)
    k_par, k_tgt, k_mem = jax.random.split(key, 3)

    params = init_params(k_par, layer_count=LAYER_COUNT, vocab=VOCAB,
                         d_model=D_MODEL, ffn_hidden=FFN_HIDDEN, num_heads=HEADS)
    target = jax.random.randint(k_tgt, (B, S), 0, VOCAB, dtype=jnp.int32)
    memory = jax.random.normal(k_mem, (B, S_MEM, D_MODEL), dtype=jnp.float32)

    fwd = jax.jit(functools.partial(decoder_forward, num_heads=HEADS, pe_base=PE_BASE))
    out = jax.block_until_ready(fwd(params, target, memory))

    assert out.shape == (B, S, VOCAB), out.shape
    # softmax rows must sum to 1
    assert jnp.allclose(jnp.sum(out, axis=-1), 1.0, atol=1e-4)
    print("KERNEL_OK")
</pallas_src>

<mosaic_0001>
module attributes {stable_mosaic.version = 11 : i64} {
  func.func @_self_attn_kernel(%arg0: i32, %arg1: i32, %arg2: memref<8x32xbf16, #tpu.memory_space<vmem>>, %arg3: memref<1x32x8xbf16, #tpu.memory_space<vmem>>, %arg4: memref<1x1x8xf32, #tpu.memory_space<vmem>>, %arg5: memref<1x32x8xbf16, #tpu.memory_space<vmem>>, %arg6: memref<1x1x8xf32, #tpu.memory_space<vmem>>, %arg7: memref<1x32x8xbf16, #tpu.memory_space<vmem>>, %arg8: memref<1x1x8xf32, #tpu.memory_space<vmem>>, %arg9: memref<1x8x32xbf16, #tpu.memory_space<vmem>>, %arg10: memref<1x32xf32, #tpu.memory_space<vmem>>, %arg11: memref<1x32xf32, #tpu.memory_space<vmem>>, %arg12: memref<1x32xf32, #tpu.memory_space<vmem>>, %arg13: memref<8x32xbf16, #tpu.memory_space<vmem>>, %arg14: memref<8x32xf32, #tpu.memory_space<vmem>>) attributes {dimension_semantics = [#tpu.dimension_semantics<parallel>, #tpu.dimension_semantics<arbitrary>], iteration_bounds = array<i64: 2, 4>, scalar_prefetch = 0 : i64, scratch_operands = 1 : i64, tpu.core_type = #tpu.core_type<tc>, window_params = [{transform_indices = @transform_0, window_bounds = array<i64: 8, 32>}, {transform_indices = @transform_1, window_bounds = array<i64: 1, 32, 8>}, {transform_indices = @transform_2, window_bounds = array<i64: 1, 1, 8>}, {transform_indices = @transform_3, window_bounds = array<i64: 1, 32, 8>}, {transform_indices = @transform_4, window_bounds = array<i64: 1, 1, 8>}, {transform_indices = @transform_5, window_bounds = array<i64: 1, 32, 8>}, {transform_indices = @transform_6, window_bounds = array<i64: 1, 1, 8>}, {transform_indices = @transform_7, window_bounds = array<i64: 1, 8, 32>}, {pipeline_mode = #tpu.pipeline_mode<synchronous>, transform_indices = @transform_8, window_bounds = array<i64: 1, 32>}, {pipeline_mode = #tpu.pipeline_mode<synchronous>, transform_indices = @transform_9, window_bounds = array<i64: 1, 32>}, {pipeline_mode = #tpu.pipeline_mode<synchronous>, transform_indices = @transform_10, window_bounds = array<i64: 1, 32>}, {transform_indices = @transform_11, window_bounds = array<i64: 8, 32>}]} {
    %c0_i32 = arith.constant 0 : i32
    %0 = arith.cmpi eq, %arg1, %c0_i32 : i32
    %1 = arith.extui %0 : i1 to i32
    %c0_i32_0 = arith.constant 0 : i32
    %2 = arith.cmpi ne, %1, %c0_i32_0 : i32
    scf.if %2 {
      %cst_37 = arith.constant 0.000000e+00 : f32
      %58 = vector.broadcast %cst_37 : f32 to vector<8x32xf32>
      %c0_38 = arith.constant 0 : index
      %c0_39 = arith.constant 0 : index
      %59 = vector.load %arg14[%c0_38, %c0_39] : memref<8x32xf32, #tpu.memory_space<vmem>>, vector<8x32xf32>
      tpu.vector_store %arg14[%c0_38, %c0_39], %58 {strides = array<i32>} : memref<8x32xf32, #tpu.memory_space<vmem>>, vector<8x32xf32>,
    } else {
    }
    %c0 = arith.constant 0 : index
    %c0_1 = arith.constant 0 : index
    %3 = vector.load %arg2[%c0, %c0_1] : memref<8x32xbf16, #tpu.memory_space<vmem>>, vector<8x32xbf16>
    %c0_2 = arith.constant 0 : index
    %c0_3 = arith.constant 0 : index
    %c0_4 = arith.constant 0 : index
    %4 = vector.load %arg3[%c0_2, %c0_3, %c0_4] : memref<1x32x8xbf16, #tpu.memory_space<vmem>>, vector<1x32x8xbf16>
    %5 = vector.shape_cast %4 : vector<1x32x8xbf16> to vector<32x8xbf16>
    %c0_5 = arith.constant 0 : index
    %c0_6 = arith.constant 0 : index
    %c0_7 = arith.constant 0 : index
    %6 = vector.load %arg4[%c0_5, %c0_6, %c0_7] : memref<1x1x8xf32, #tpu.memory_space<vmem>>, vector<1x1x8xf32>
    %7 = vector.shape_cast %6 : vector<1x1x8xf32> to vector<1x8xf32>
    %c0_8 = arith.constant 0 : index
    %c0_9 = arith.constant 0 : index
    %c0_10 = arith.constant 0 : index
    %8 = vector.load %arg5[%c0_8, %c0_9, %c0_10] : memref<1x32x8xbf16, #tpu.memory_space<vmem>>, vector<1x32x8xbf16>
    %9 = vector.shape_cast %8 : vector<1x32x8xbf16> to vector<32x8xbf16>
    %c0_11 = arith.constant 0 : index
    %c0_12 = arith.constant 0 : index
    %c0_13 = arith.constant 0 : index
    %10 = vector.load %arg6[%c0_11, %c0_12, %c0_13] : memref<1x1x8xf32, #tpu.memory_space<vmem>>, vector<1x1x8xf32>
    %11 = vector.shape_cast %10 : vector<1x1x8xf32> to vector<1x8xf32>
    %c0_14 = arith.constant 0 : index
    %c0_15 = arith.constant 0 : index
    %c0_16 = arith.constant 0 : index
    %12 = vector.load %arg7[%c0_14, %c0_15, %c0_16] : memref<1x32x8xbf16, #tpu.memory_space<vmem>>, vector<1x32x8xbf16>
    %13 = vector.shape_cast %12 : vector<1x32x8xbf16> to vector<32x8xbf16>
    %c0_17 = arith.constant 0 : index
    %c0_18 = arith.constant 0 : index
    %c0_19 = arith.constant 0 : index
    %14 = vector.load %arg8[%c0_17, %c0_18, %c0_19] : memref<1x1x8xf32, #tpu.memory_space<vmem>>, vector<1x1x8xf32>
    %15 = vector.shape_cast %14 : vector<1x1x8xf32> to vector<1x8xf32>
    %cst = arith.constant dense<0.000000e+00> : vector<8x8xf32>
    %16 = tpu.matmul %3, %5, %cst {dimension_numbers = #tpu.dot_dimension_numbers<[1], [0], [0], [1], [0, 0, 1, 1], [], []>} : vector<8x32xbf16>, vector<32x8xbf16>, vector<8x8xf32> -> vector<8x8xf32>
    %17 = vector.broadcast %7 : vector<1x8xf32> to vector<8x8xf32>
    %18 = arith.addf %16, %17 : vector<8x8xf32>
    %cst_20 = arith.constant dense<0.000000e+00> : vector<8x8xf32>
    %19 = tpu.matmul %3, %9, %cst_20 {dimension_numbers = #tpu.dot_dimension_numbers<[1], [0], [0], [1], [0, 0, 1, 1], [], []>} : vector<8x32xbf16>, vector<32x8xbf16>, vector<8x8xf32> -> vector<8x8xf32>
    %20 = vector.broadcast %11 : vector<1x8xf32> to vector<8x8xf32>
    %21 = arith.addf %19, %20 : vector<8x8xf32>
    %cst_21 = arith.constant dense<0.000000e+00> : vector<8x8xf32>
    %22 = tpu.matmul %3, %13, %cst_21 {dimension_numbers = #tpu.dot_dimension_numbers<[1], [0], [0], [1], [0, 0, 1, 1], [], []>} : vector<8x32xbf16>, vector<32x8xbf16>, vector<8x8xf32> -> vector<8x8xf32>
    %23 = vector.broadcast %15 : vector<1x8xf32> to vector<8x8xf32>
    %24 = arith.addf %22, %23 : vector<8x8xf32>
    %25 = arith.truncf %18 : vector<8x8xf32> to vector<8x8xbf16>
    %26 = arith.truncf %21 : vector<8x8xf32> to vector<8x8xbf16>
    %cst_22 = arith.constant dense<0.000000e+00> : vector<8x8xf32>
    %27 = tpu.matmul %25, %26, %cst_22 {dimension_numbers = #tpu.dot_dimension_numbers<[1], [1], [0], [0], [0, 0, 1, 0], [], []>} : vector<8x8xbf16>, vector<8x8xbf16>, vector<8x8xf32> -> vector<8x8xf32>
    %cst_23 = arith.constant 0.353553385 : f32
    %28 = vector.broadcast %cst_23 : f32 to vector<8x8xf32>
    %29 = arith.mulf %27, %28 : vector<8x8xf32>
    %30 = tpu.iota {dimensions = array<i32: 0>} : vector<8x8xi32>
    %31 = tpu.iota {dimensions = array<i32: 1>} : vector<8x8xi32>
    %32 = arith.cmpi sle, %31, %30 : vector<8x8xi32>
    %cst_24 = arith.constant -1.000000e+09 : f32
    %33 = vector.broadcast %cst_24 : f32 to vector<8x8xf32>
    %34 = arith.select %32, %29, %33 : vector<8x8xi1>, vector<8x8xf32>
    %cst_25 = arith.constant dense<0xFF800000> : vector<8xf32>
    %35 = vector.multi_reduction <maximumf>, %34, %cst_25 [1] : vector<8x8xf32> to vector<8xf32>
    %36 = vector.shape_cast %35 : vector<8xf32> to vector<8x1xf32>
    %37 = vector.broadcast %36 : vector<8x1xf32> to vector<8x8xf32>
    %38 = arith.subf %34, %37 : vector<8x8xf32>
    %39 = math.exp %38 : vector<8x8xf32>
    %cst_26 = arith.constant dense<0.000000e+00> : vector<8xf32>
    %40 = vector.multi_reduction <add>, %39, %cst_26 [1] : vector<8x8xf32> to vector<8xf32>
    %41 = vector.shape_cast %40 : vector<8xf32> to vector<8x1xf32>
    %42 = tpu.reciprocal %41 {approx = true} : vector<8x1xf32> -> vector<8x1xf32>
    %43 = vector.broadcast %42 : vector<8x1xf32> to vector<8x8xf32>
    %44 = arith.mulf %39, %43 : vector<8x8xf32>
    %45 = arith.truncf %44 : vector<8x8xf32> to vector<8x8xbf16>
    %46 = arith.truncf %24 : vector<8x8xf32> to vector<8x8xbf16>
    %cst_27 = arith.constant dense<0.000000e+00> : vector<8x8xf32>
    %47 = tpu.matmul %45, %46, %cst_27 {dimension_numbers = #tpu.dot_dimension_numbers<[1], [0], [0], [1], [0, 0, 1, 1], [], []>} : vector<8x8xbf16>, vector<8x8xbf16>, vector<8x8xf32> -> vector<8x8xf32>
    %c0_28 = arith.constant 0 : index
    %c0_29 = arith.constant 0 : index
    %c0_30 = arith.constant 0 : index
    %48 = vector.load %arg9[%c0_28, %c0_29, %c0_30] : memref<1x8x32xbf16, #tpu.memory_space<vmem>>, vector<1x8x32xbf16>
    %49 = vector.shape_cast %48 : vector<1x8x32xbf16> to vector<8x32xbf16>
    %c0_31 = arith.constant 0 : index
    %c0_32 = arith.constant 0 : index
    %50 = vector.load %arg14[%c0_31, %c0_32] : memref<8x32xf32, #tpu.memory_space<vmem>>, vector<8x32xf32>
    %51 = arith.truncf %47 : vector<8x8xf32> to vector<8x8xbf16>
    %cst_33 = arith.constant dense<0.000000e+00> : vector<8x32xf32>
    %52 = tpu.matmul %51, %49, %cst_33 {dimension_numbers = #tpu.dot_dimension_numbers<[1], [0], [0], [1], [0, 0, 1, 1], [], []>} : vector<8x8xbf16>, vector<8x32xbf16>, vector<8x32xf32> -> vector<8x32xf32>
    %53 = arith.addf %50, %52 : vector<8x32xf32>
    %c0_34 = arith.constant 0 : index
    %c0_35 = arith.constant 0 : index
    %54 = vector.load %arg14[%c0_34, %c0_35] : memref<8x32xf32, #tpu.memory_space<vmem>>, vector<8x32xf32>
    tpu.vector_store %arg14[%c0_34, %c0_35], %53 {strides = array<i32>} : memref<8x32xf32, #tpu.memory_space<vmem>>, vector<8x32xf32>,
    %c3_i32 = arith.constant 3 : i32
    %55 = arith.cmpi eq, %arg1, %c3_i32 : i32
    %56 = arith.extui %55 : i1 to i32
    %c0_i32_36 = arith.constant 0 : i32
    %57 = arith.cmpi ne, %56, %c0_i32_36 : i32
    scf.if %57 {
      %c0_37 = arith.constant 0 : index
      %c0_38 = arith.constant 0 : index
      %58 = vector.load %arg14[%c0_37, %c0_38] : memref<8x32xf32, #tpu.memory_space<vmem>>, vector<8x32xf32>
      %c0_39 = arith.constant 0 : index
      %c0_40 = arith.constant 0 : index
      %59 = vector.load %arg10[%c0_39, %c0_40] : memref<1x32xf32, #tpu.memory_space<vmem>>, vector<1x32xf32>
      %60 = vector.broadcast %59 : vector<1x32xf32> to vector<8x32xf32>
      %61 = arith.addf %58, %60 : vector<8x32xf32>
      %62 = arith.extf %3 : vector<8x32xbf16> to vector<8x32xf32>
      %63 = arith.addf %61, %62 : vector<8x32xf32>
      %c0_41 = arith.constant 0 : index
      %c0_42 = arith.constant 0 : index
      %64 = vector.load %arg11[%c0_41, %c0_42] : memref<1x32xf32, #tpu.memory_space<vmem>>, vector<1x32xf32>
      %c0_43 = arith.constant 0 : index
      %c0_44 = arith.constant 0 : index
      %65 = vector.load %arg12[%c0_43, %c0_44] : memref<1x32xf32, #tpu.memory_space<vmem>>, vector<1x32xf32>
      %cst_45 = arith.constant dense<0.000000e+00> : vector<8xf32>
      %66 = vector.multi_reduction <add>, %63, %cst_45 [1] : vector<8x32xf32> to vector<8xf32>
      %67 = vector.shape_cast %66 : vector<8xf32> to vector<8x1xf32>
      %cst_46 = arith.constant 3.200000e+01 : f32
      %68 = vector.broadcast %cst_46 : f32 to vector<8x1xf32>
      %69 = arith.divf %67, %68 : vector<8x1xf32>
      %70 = vector.broadcast %69 : vector<8x1xf32> to vector<8x32xf32>
      %71 = arith.subf %63, %70 : vector<8x32xf32>
      %72 = arith.mulf %71, %71 : vector<8x32xf32>
      %cst_47 = arith.constant dense<0.000000e+00> : vector<8xf32>
      %73 = vector.multi_reduction <add>, %72, %cst_47 [1] : vector<8x32xf32> to vector<8xf32>
      %74 = vector.shape_cast %73 : vector<8xf32> to vector<8x1xf32>
      %cst_48 = arith.constant 3.200000e+01 : f32
      %75 = vector.broadcast %cst_48 : f32 to vector<8x1xf32>
      %76 = arith.divf %74, %75 : vector<8x1xf32>
      %77 = vector.broadcast %69 : vector<8x1xf32> to vector<8x32xf32>
      %78 = arith.subf %63, %77 : vector<8x32xf32>
      %cst_49 = arith.constant 9.99999974E-6 : f32
      %79 = vector.broadcast %cst_49 : f32 to vector<8x1xf32>
      %80 = arith.addf %76, %79 : vector<8x1xf32>
      %81 = math.rsqrt %80 : vector<8x1xf32>
      %82 = vector.broadcast %81 : vector<8x1xf32> to vector<8x32xf32>
      %83 = arith.mulf %78, %82 : vector<8x32xf32>
      %84 = vector.broadcast %64 : vector<1x32xf32> to vector<8x32xf32>
      %85 = arith.mulf %83, %84 : vector<8x32xf32>
      %86 = vector.broadcast %65 : vector<1x32xf32> to vector<8x32xf32>
      %87 = arith.addf %85, %86 : vector<8x32xf32>
      %88 = arith.truncf %87 : vector<8x32xf32> to vector<8x32xbf16>
      %c0_50 = arith.constant 0 : index
      %c0_51 = arith.constant 0 : index
      %89 = vector.load %arg13[%c0_50, %c0_51] : memref<8x32xbf16, #tpu.memory_space<vmem>>, vector<8x32xbf16>
      tpu.vector_store %arg13[%c0_50, %c0_51], %88 {strides = array<i32>} : memref<8x32xbf16, #tpu.memory_space<vmem>>, vector<8x32xbf16>,
    } else {
    }
    return
  }
  func.func @transform_0(%arg0: i32, %arg1: i32) -> (i32, i32) {
    %c0_i32 = arith.constant 0 : i32
    %c0_i32_0 = arith.constant 0 : i32
    return %arg0, %c0_i32 : i32, i32
  }
  func.func @transform_1(%arg0: i32, %arg1: i32) -> (i32, i32, i32) {
    %c0_i32 = arith.constant 0 : i32
    %c0_i32_0 = arith.constant 0 : i32
    %c0_i32_1 = arith.constant 0 : i32
    return %arg1, %c0_i32, %c0_i32_0 : i32, i32, i32
  }
  func.func @transform_2(%arg0: i32, %arg1: i32) -> (i32, i32, i32) {
    %c0_i32 = arith.constant 0 : i32
    %c0_i32_0 = arith.constant 0 : i32
    %c0_i32_1 = arith.constant 0 : i32
    return %arg1, %c0_i32, %c0_i32_0 : i32, i32, i32
  }
  func.func @transform_3(%arg0: i32, %arg1: i32) -> (i32, i32, i32) {
    %c0_i32 = arith.constant 0 : i32
    %c0_i32_0 = arith.constant 0 : i32
    %c0_i32_1 = arith.constant 0 : i32
    return %arg1, %c0_i32, %c0_i32_0 : i32, i32, i32
  }
  func.func @transform_4(%arg0: i32, %arg1: i32) -> (i32, i32, i32) {
    %c0_i32 = arith.constant 0 : i32
    %c0_i32_0 = arith.constant 0 : i32
    %c0_i32_1 = arith.constant 0 : i32
    return %arg1, %c0_i32, %c0_i32_0 : i32, i32, i32
  }
  func.func @transform_5(%arg0: i32, %arg1: i32) -> (i32, i32, i32) {
    %c0_i32 = arith.constant 0 : i32
    %c0_i32_0 = arith.constant 0 : i32
    %c0_i32_1 = arith.constant 0 : i32
    return %arg1, %c0_i32, %c0_i32_0 : i32, i32, i32
  }
  func.func @transform_6(%arg0: i32, %arg1: i32) -> (i32, i32, i32) {
    %c0_i32 = arith.constant 0 : i32
    %c0_i32_0 = arith.constant 0 : i32
    %c0_i32_1 = arith.constant 0 : i32
    return %arg1, %c0_i32, %c0_i32_0 : i32, i32, i32
  }
  func.func @transform_7(%arg0: i32, %arg1: i32) -> (i32, i32, i32) {
    %c0_i32 = arith.constant 0 : i32
    %c0_i32_0 = arith.constant 0 : i32
    %c0_i32_1 = arith.constant 0 : i32
    return %arg1, %c0_i32, %c0_i32_0 : i32, i32, i32
  }
  func.func @transform_8(%arg0: i32, %arg1: i32) -> (i32, i32) {
    %c0_i32 = arith.constant 0 : i32
    %c0_i32_0 = arith.constant 0 : i32
    %c0_i32_1 = arith.constant 0 : i32
    return %c0_i32, %c0_i32_0 : i32, i32
  }
  func.func @transform_9(%arg0: i32, %arg1: i32) -> (i32, i32) {
    %c0_i32 = arith.constant 0 : i32
    %c0_i32_0 = arith.constant 0 : i32
    %c0_i32_1 = arith.constant 0 : i32
    return %c0_i32, %c0_i32_0 : i32, i32
  }
  func.func @transform_10(%arg0: i32, %arg1: i32) -> (i32, i32) {
    %c0_i32 = arith.constant 0 : i32
    %c0_i32_0 = arith.constant 0 : i32
    %c0_i32_1 = arith.constant 0 : i32
    return %c0_i32, %c0_i32_0 : i32, i32
  }
  func.func @transform_11(%arg0: i32, %arg1: i32) -> (i32, i32) {
    %c0_i32 = arith.constant 0 : i32
    %c0_i32_0 = arith.constant 0 : i32
    return %arg0, %c0_i32 : i32, i32
  }
}

module attributes {stable_mosaic.version = 11 : i64} {
  func.func @_cross_attn_kernel(%arg0: i32, %arg1: i32, %arg2: memref<8x32xbf16, #tpu.memory_space<vmem>>, %arg3: memref<8x32xbf16, #tpu.memory_space<vmem>>, %arg4: memref<1x32x8xbf16, #tpu.memory_space<vmem>>, %arg5: memref<1x1x8xf32, #tpu.memory_space<vmem>>, %arg6: memref<1x32x8xbf16, #tpu.memory_space<vmem>>, %arg7: memref<1x1x8xf32, #tpu.memory_space<vmem>>, %arg8: memref<1x32x8xbf16, #tpu.memory_space<vmem>>, %arg9: memref<1x1x8xf32, #tpu.memory_space<vmem>>, %arg10: memref<1x8x32xbf16, #tpu.memory_space<vmem>>, %arg11: memref<1x32xf32, #tpu.memory_space<vmem>>, %arg12: memref<1x32xf32, #tpu.memory_space<vmem>>, %arg13: memref<1x32xf32, #tpu.memory_space<vmem>>, %arg14: memref<8x32xbf16, #tpu.memory_space<vmem>>, %arg15: memref<8x32xf32, #tpu.memory_space<vmem>>) attributes {dimension_semantics = [#tpu.dimension_semantics<parallel>, #tpu.dimension_semantics<arbitrary>], iteration_bounds = array<i64: 2, 4>, scalar_prefetch = 0 : i64, scratch_operands = 1 : i64, tpu.core_type = #tpu.core_type<tc>, window_params = [{transform_indices = @transform_0, window_bounds = array<i64: 8, 32>}, {transform_indices = @transform_1, window_bounds = array<i64: 8, 32>}, {transform_indices = @transform_2, window_bounds = array<i64: 1, 32, 8>}, {transform_indices = @transform_3, window_bounds = array<i64: 1, 1, 8>}, {transform_indices = @transform_4, window_bounds = array<i64: 1, 32, 8>}, {transform_indices = @transform_5, window_bounds = array<i64: 1, 1, 8>}, {transform_indices = @transform_6, window_bounds = array<i64: 1, 32, 8>}, {transform_indices = @transform_7, window_bounds = array<i64: 1, 1, 8>}, {transform_indices = @transform_8, window_bounds = array<i64: 1, 8, 32>}, {pipeline_mode = #tpu.pipeline_mode<synchronous>, transform_indices = @transform_9, window_bounds = array<i64: 1, 32>}, {pipeline_mode = #tpu.pipeline_mode<synchronous>, transform_indices = @transform_10, window_bounds = array<i64: 1, 32>}, {pipeline_mode = #tpu.pipeline_mode<synchronous>, transform_indices = @transform_11, window_bounds = array<i64: 1, 32>}, {transform_indices = @transform_12, window_bounds = array<i64: 8, 32>}]} {
    %c0_i32 = arith.constant 0 : i32
    %0 = arith.cmpi eq, %arg1, %c0_i32 : i32
    %1 = arith.extui %0 : i1 to i32
    %c0_i32_0 = arith.constant 0 : i32
    %2 = arith.cmpi ne, %1, %c0_i32_0 : i32
    scf.if %2 {
      %cst_38 = arith.constant 0.000000e+00 : f32
      %54 = vector.broadcast %cst_38 : f32 to vector<8x32xf32>
      %c0_39 = arith.constant 0 : index
      %c0_40 = arith.constant 0 : index
      %55 = vector.load %arg15[%c0_39, %c0_40] : memref<8x32xf32, #tpu.memory_space<vmem>>, vector<8x32xf32>
      tpu.vector_store %arg15[%c0_39, %c0_40], %54 {strides = array<i32>} : memref<8x32xf32, #tpu.memory_space<vmem>>, vector<8x32xf32>,
    } else {
    }
    %c0 = arith.constant 0 : index
    %c0_1 = arith.constant 0 : index
    %3 = vector.load %arg2[%c0, %c0_1] : memref<8x32xbf16, #tpu.memory_space<vmem>>, vector<8x32xbf16>
    %c0_2 = arith.constant 0 : index
    %c0_3 = arith.constant 0 : index
    %4 = vector.load %arg3[%c0_2, %c0_3] : memref<8x32xbf16, #tpu.memory_space<vmem>>, vector<8x32xbf16>
    %c0_4 = arith.constant 0 : index
    %c0_5 = arith.constant 0 : index
    %c0_6 = arith.constant 0 : index
    %5 = vector.load %arg4[%c0_4, %c0_5, %c0_6] : memref<1x32x8xbf16, #tpu.memory_space<vmem>>, vector<1x32x8xbf16>
    %6 = vector.shape_cast %5 : vector<1x32x8xbf16> to vector<32x8xbf16>
    %c0_7 = arith.constant 0 : index
    %c0_8 = arith.constant 0 : index
    %c0_9 = arith.constant 0 : index
    %7 = vector.load %arg5[%c0_7, %c0_8, %c0_9] : memref<1x1x8xf32, #tpu.memory_space<vmem>>, vector<1x1x8xf32>
    %8 = vector.shape_cast %7 : vector<1x1x8xf32> to vector<1x8xf32>
    %c0_10 = arith.constant 0 : index
    %c0_11 = arith.constant 0 : index
    %c0_12 = arith.constant 0 : index
    %9 = vector.load %arg6[%c0_10, %c0_11, %c0_12] : memref<1x32x8xbf16, #tpu.memory_space<vmem>>, vector<1x32x8xbf16>
    %10 = vector.shape_cast %9 : vector<1x32x8xbf16> to vector<32x8xbf16>
    %c0_13 = arith.constant 0 : index
    %c0_14 = arith.constant 0 : index
    %c0_15 = arith.constant 0 : index
    %11 = vector.load %arg7[%c0_13, %c0_14, %c0_15] : memref<1x1x8xf32, #tpu.memory_space<vmem>>, vector<1x1x8xf32>
    %12 = vector.shape_cast %11 : vector<1x1x8xf32> to vector<1x8xf32>
    %c0_16 = arith.constant 0 : index
    %c0_17 = arith.constant 0 : index
    %c0_18 = arith.constant 0 : index
    %13 = vector.load %arg8[%c0_16, %c0_17, %c0_18] : memref<1x32x8xbf16, #tpu.memory_space<vmem>>, vector<1x32x8xbf16>
    %14 = vector.shape_cast %13 : vector<1x32x8xbf16> to vector<32x8xbf16>
    %c0_19 = arith.constant 0 : index
    %c0_20 = arith.constant 0 : index
    %c0_21 = arith.constant 0 : index
    %15 = vector.load %arg9[%c0_19, %c0_20, %c0_21] : memref<1x1x8xf32, #tpu.memory_space<vmem>>, vector<1x1x8xf32>
    %16 = vector.shape_cast %15 : vector<1x1x8xf32> to vector<1x8xf32>
    %cst = arith.constant dense<0.000000e+00> : vector<8x8xf32>
    %17 = tpu.matmul %3, %6, %cst {dimension_numbers = #tpu.dot_dimension_numbers<[1], [0], [0], [1], [0, 0, 1, 1], [], []>} : vector<8x32xbf16>, vector<32x8xbf16>, vector<8x8xf32> -> vector<8x8xf32>
    %18 = vector.broadcast %8 : vector<1x8xf32> to vector<8x8xf32>
    %19 = arith.addf %17, %18 : vector<8x8xf32>
    %cst_22 = arith.constant dense<0.000000e+00> : vector<8x8xf32>
    %20 = tpu.matmul %4, %10, %cst_22 {dimension_numbers = #tpu.dot_dimension_numbers<[1], [0], [0], [1], [0, 0, 1, 1], [], []>} : vector<8x32xbf16>, vector<32x8xbf16>, vector<8x8xf32> -> vector<8x8xf32>
    %21 = vector.broadcast %12 : vector<1x8xf32> to vector<8x8xf32>
    %22 = arith.addf %20, %21 : vector<8x8xf32>
    %cst_23 = arith.constant dense<0.000000e+00> : vector<8x8xf32>
    %23 = tpu.matmul %4, %14, %cst_23 {dimension_numbers = #tpu.dot_dimension_numbers<[1], [0], [0], [1], [0, 0, 1, 1], [], []>} : vector<8x32xbf16>, vector<32x8xbf16>, vector<8x8xf32> -> vector<8x8xf32>
    %24 = vector.broadcast %16 : vector<1x8xf32> to vector<8x8xf32>
    %25 = arith.addf %23, %24 : vector<8x8xf32>
    %26 = arith.truncf %19 : vector<8x8xf32> to vector<8x8xbf16>
    %27 = arith.truncf %22 : vector<8x8xf32> to vector<8x8xbf16>
    %cst_24 = arith.constant dense<0.000000e+00> : vector<8x8xf32>
    %28 = tpu.matmul %26, %27, %cst_24 {dimension_numbers = #tpu.dot_dimension_numbers<[1], [1], [0], [0], [0, 0, 1, 0], [], []>} : vector<8x8xbf16>, vector<8x8xbf16>, vector<8x8xf32> -> vector<8x8xf32>
    %cst_25 = arith.constant 0.353553385 : f32
    %29 = vector.broadcast %cst_25 : f32 to vector<8x8xf32>
    %30 = arith.mulf %28, %29 : vector<8x8xf32>
    %cst_26 = arith.constant dense<0xFF800000> : vector<8xf32>
    %31 = vector.multi_reduction <maximumf>, %30, %cst_26 [1] : vector<8x8xf32> to vector<8xf32>
    %32 = vector.shape_cast %31 : vector<8xf32> to vector<8x1xf32>
    %33 = vector.broadcast %32 : vector<8x1xf32> to vector<8x8xf32>
    %34 = arith.subf %30, %33 : vector<8x8xf32>
    %35 = math.exp %34 : vector<8x8xf32>
    %cst_27 = arith.constant dense<0.000000e+00> : vector<8xf32>
    %36 = vector.multi_reduction <add>, %35, %cst_27 [1] : vector<8x8xf32> to vector<8xf32>
    %37 = vector.shape_cast %36 : vector<8xf32> to vector<8x1xf32>
    %38 = tpu.reciprocal %37 {approx = true} : vector<8x1xf32> -> vector<8x1xf32>
    %39 = vector.broadcast %38 : vector<8x1xf32> to vector<8x8xf32>
    %40 = arith.mulf %35, %39 : vector<8x8xf32>
    %41 = arith.truncf %40 : vector<8x8xf32> to vector<8x8xbf16>
    %42 = arith.truncf %25 : vector<8x8xf32> to vector<8x8xbf16>
    %cst_28 = arith.constant dense<0.000000e+00> : vector<8x8xf32>
    %43 = tpu.matmul %41, %42, %cst_28 {dimension_numbers = #tpu.dot_dimension_numbers<[1], [0], [0], [1], [0, 0, 1, 1], [], []>} : vector<8x8xbf16>, vector<8x8xbf16>, vector<8x8xf32> -> vector<8x8xf32>
    %c0_29 = arith.constant 0 : index
    %c0_30 = arith.constant 0 : index
    %c0_31 = arith.constant 0 : index
    %44 = vector.load %arg10[%c0_29, %c0_30, %c0_31] : memref<1x8x32xbf16, #tpu.memory_space<vmem>>, vector<1x8x32xbf16>
    %45 = vector.shape_cast %44 : vector<1x8x32xbf16> to vector<8x32xbf16>
    %c0_32 = arith.constant 0 : index
    %c0_33 = arith.constant 0 : index
    %46 = vector.load %arg15[%c0_32, %c0_33] : memref<8x32xf32, #tpu.memory_space<vmem>>, vector<8x32xf32>
    %47 = arith.truncf %43 : vector<8x8xf32> to vector<8x8xbf16>
    %cst_34 = arith.constant dense<0.000000e+00> : vector<8x32xf32>
    %48 = tpu.matmul %47, %45, %cst_34 {dimension_numbers = #tpu.dot_dimension_numbers<[1], [0], [0], [1], [0, 0, 1, 1], [], []>} : vector<8x8xbf16>, vector<8x32xbf16>, vector<8x32xf32> -> vector<8x32xf32>
    %49 = arith.addf %46, %48 : vector<8x32xf32>
    %c0_35 = arith.constant 0 : index
    %c0_36 = arith.constant 0 : index
    %50 = vector.load %arg15[%c0_35, %c0_36] : memref<8x32xf32, #tpu.memory_space<vmem>>, vector<8x32xf32>
    tpu.vector_store %arg15[%c0_35, %c0_36], %49 {strides = array<i32>} : memref<8x32xf32, #tpu.memory_space<vmem>>, vector<8x32xf32>,
    %c3_i32 = arith.constant 3 : i32
    %51 = arith.cmpi eq, %arg1, %c3_i32 : i32
    %52 = arith.extui %51 : i1 to i32
    %c0_i32_37 = arith.constant 0 : i32
    %53 = arith.cmpi ne, %52, %c0_i32_37 : i32
    scf.if %53 {
      %c0_38 = arith.constant 0 : index
      %c0_39 = arith.constant 0 : index
      %54 = vector.load %arg15[%c0_38, %c0_39] : memref<8x32xf32, #tpu.memory_space<vmem>>, vector<8x32xf32>
      %c0_40 = arith.constant 0 : index
      %c0_41 = arith.constant 0 : index
      %55 = vector.load %arg11[%c0_40, %c0_41] : memref<1x32xf32, #tpu.memory_space<vmem>>, vector<1x32xf32>
      %56 = vector.broadcast %55 : vector<1x32xf32> to vector<8x32xf32>
      %57 = arith.addf %54, %56 : vector<8x32xf32>
      %58 = arith.extf %3 : vector<8x32xbf16> to vector<8x32xf32>
      %59 = arith.addf %57, %58 : vector<8x32xf32>
      %c0_42 = arith.constant 0 : index
      %c0_43 = arith.constant 0 : index
      %60 = vector.load %arg12[%c0_42, %c0_43] : memref<1x32xf32, #tpu.memory_space<vmem>>, vector<1x32xf32>
      %c0_44 = arith.constant 0 : index
      %c0_45 = arith.constant 0 : index
      %61 = vector.load %arg13[%c0_44, %c0_45] : memref<1x32xf32, #tpu.memory_space<vmem>>, vector<1x32xf32>
      %cst_46 = arith.constant dense<0.000000e+00> : vector<8xf32>
      %62 = vector.multi_reduction <add>, %59, %cst_46 [1] : vector<8x32xf32> to vector<8xf32>
      %63 = vector.shape_cast %62 : vector<8xf32> to vector<8x1xf32>
      %cst_47 = arith.constant 3.200000e+01 : f32
      %64 = vector.broadcast %cst_47 : f32 to vector<8x1xf32>
      %65 = arith.divf %63, %64 : vector<8x1xf32>
      %66 = vector.broadcast %65 : vector<8x1xf32> to vector<8x32xf32>
      %67 = arith.subf %59, %66 : vector<8x32xf32>
      %68 = arith.mulf %67, %67 : vector<8x32xf32>
      %cst_48 = arith.constant dense<0.000000e+00> : vector<8xf32>
      %69 = vector.multi_reduction <add>, %68, %cst_48 [1] : vector<8x32xf32> to vector<8xf32>
      %70 = vector.shape_cast %69 : vector<8xf32> to vector<8x1xf32>
      %cst_49 = arith.constant 3.200000e+01 : f32
      %71 = vector.broadcast %cst_49 : f32 to vector<8x1xf32>
      %72 = arith.divf %70, %71 : vector<8x1xf32>
      %73 = vector.broadcast %65 : vector<8x1xf32> to vector<8x32xf32>
      %74 = arith.subf %59, %73 : vector<8x32xf32>
      %cst_50 = arith.constant 9.99999974E-6 : f32
      %75 = vector.broadcast %cst_50 : f32 to vector<8x1xf32>
      %76 = arith.addf %72, %75 : vector<8x1xf32>
      %77 = math.rsqrt %76 : vector<8x1xf32>
      %78 = vector.broadcast %77 : vector<8x1xf32> to vector<8x32xf32>
      %79 = arith.mulf %74, %78 : vector<8x32xf32>
      %80 = vector.broadcast %60 : vector<1x32xf32> to vector<8x32xf32>
      %81 = arith.mulf %79, %80 : vector<8x32xf32>
      %82 = vector.broadcast %61 : vector<1x32xf32> to vector<8x32xf32>
      %83 = arith.addf %81, %82 : vector<8x32xf32>
      %84 = arith.truncf %83 : vector<8x32xf32> to vector<8x32xbf16>
      %c0_51 = arith.constant 0 : index
      %c0_52 = arith.constant 0 : index
      %85 = vector.load %arg14[%c0_51, %c0_52] : memref<8x32xbf16, #tpu.memory_space<vmem>>, vector<8x32xbf16>
      tpu.vector_store %arg14[%c0_51, %c0_52], %84 {strides = array<i32>} : memref<8x32xbf16, #tpu.memory_space<vmem>>, vector<8x32xbf16>,
    } else {
    }
    return
  }
  func.func @transform_0(%arg0: i32, %arg1: i32) -> (i32, i32) {
    %c0_i32 = arith.constant 0 : i32
    %c0_i32_0 = arith.constant 0 : i32
    return %arg0, %c0_i32 : i32, i32
  }
  func.func @transform_1(%arg0: i32, %arg1: i32) -> (i32, i32) {
    %c0_i32 = arith.constant 0 : i32
    %c0_i32_0 = arith.constant 0 : i32
    return %arg0, %c0_i32 : i32, i32
  }
  func.func @transform_2(%arg0: i32, %arg1: i32) -> (i32, i32, i32) {
    %c0_i32 = arith.constant 0 : i32
    %c0_i32_0 = arith.constant 0 : i32
    %c0_i32_1 = arith.constant 0 : i32
    return %arg1, %c0_i32, %c0_i32_0 : i32, i32, i32
  }
  func.func @transform_3(%arg0: i32, %arg1: i32) -> (i32, i32, i32) {
    %c0_i32 = arith.constant 0 : i32
    %c0_i32_0 = arith.constant 0 : i32
    %c0_i32_1 = arith.constant 0 : i32
    return %arg1, %c0_i32, %c0_i32_0 : i32, i32, i32
  }
  func.func @transform_4(%arg0: i32, %arg1: i32) -> (i32, i32, i32) {
    %c0_i32 = arith.constant 0 : i32
    %c0_i32_0 = arith.constant 0 : i32
    %c0_i32_1 = arith.constant 0 : i32
    return %arg1, %c0_i32, %c0_i32_0 : i32, i32, i32
  }
  func.func @transform_5(%arg0: i32, %arg1: i32) -> (i32, i32, i32) {
    %c0_i32 = arith.constant 0 : i32
    %c0_i32_0 = arith.constant 0 : i32
    %c0_i32_1 = arith.constant 0 : i32
    return %arg1, %c0_i32, %c0_i32_0 : i32, i32, i32
  }
  func.func @transform_6(%arg0: i32, %arg1: i32) -> (i32, i32, i32) {
    %c0_i32 = arith.constant 0 : i32
    %c0_i32_0 = arith.constant 0 : i32
    %c0_i32_1 = arith.constant 0 : i32
    return %arg1, %c0_i32, %c0_i32_0 : i32, i32, i32
  }
  func.func @transform_7(%arg0: i32, %arg1: i32) -> (i32, i32, i32) {
    %c0_i32 = arith.constant 0 : i32
    %c0_i32_0 = arith.constant 0 : i32
    %c0_i32_1 = arith.constant 0 : i32
    return %arg1, %c0_i32, %c0_i32_0 : i32, i32, i32
  }
  func.func @transform_8(%arg0: i32, %arg1: i32) -> (i32, i32, i32) {
    %c0_i32 = arith.constant 0 : i32
    %c0_i32_0 = arith.constant 0 : i32
    %c0_i32_1 = arith.constant 0 : i32
    return %arg1, %c0_i32, %c0_i32_0 : i32, i32, i32
  }
  func.func @transform_9(%arg0: i32, %arg1: i32) -> (i32, i32) {
    %c0_i32 = arith.constant 0 : i32
    %c0_i32_0 = arith.constant 0 : i32
    %c0_i32_1 = arith.constant 0 : i32
    return %c0_i32, %c0_i32_0 : i32, i32
  }
  func.func @transform_10(%arg0: i32, %arg1: i32) -> (i32, i32) {
    %c0_i32 = arith.constant 0 : i32
    %c0_i32_0 = arith.constant 0 : i32
    %c0_i32_1 = arith.constant 0 : i32
    return %c0_i32, %c0_i32_0 : i32, i32
  }
  func.func @transform_11(%arg0: i32, %arg1: i32) -> (i32, i32) {
    %c0_i32 = arith.constant 0 : i32
    %c0_i32_0 = arith.constant 0 : i32
    %c0_i32_1 = arith.constant 0 : i32
    return %c0_i32, %c0_i32_0 : i32, i32
  }
  func.func @transform_12(%arg0: i32, %arg1: i32) -> (i32, i32) {
    %c0_i32 = arith.constant 0 : i32
    %c0_i32_0 = arith.constant 0 : i32
    return %arg0, %c0_i32 : i32, i32
  }
}

module attributes {stable_mosaic.version = 11 : i64} {
  func.func @_linear_softmax_kernel(%arg0: i32, %arg1: memref<8x32xbf16, #tpu.memory_space<vmem>>, %arg2: memref<32x64xbf16, #tpu.memory_space<vmem>>, %arg3: memref<1x64xf32, #tpu.memory_space<vmem>>, %arg4: memref<8x64xf32, #tpu.memory_space<vmem>>) attributes {dimension_semantics = [#tpu.dimension_semantics<parallel>], iteration_bounds = array<i64: 2>, scalar_prefetch = 0 : i64, scratch_operands = 0 : i64, tpu.core_type = #tpu.core_type<tc>, window_params = [{transform_indices = @transform_0, window_bounds = array<i64: 8, 32>}, {pipeline_mode = #tpu.pipeline_mode<synchronous>, transform_indices = @transform_1, window_bounds = array<i64: 32, 64>}, {pipeline_mode = #tpu.pipeline_mode<synchronous>, transform_indices = @transform_2, window_bounds = array<i64: 1, 64>}, {transform_indices = @transform_3, window_bounds = array<i64: 8, 64>}]} {
    %c0 = arith.constant 0 : index
    %c0_0 = arith.constant 0 : index
    %0 = vector.load %arg1[%c0, %c0_0] : memref<8x32xbf16, #tpu.memory_space<vmem>>, vector<8x32xbf16>
    %c0_1 = arith.constant 0 : index
    %c0_2 = arith.constant 0 : index
    %1 = vector.load %arg2[%c0_1, %c0_2] : memref<32x64xbf16, #tpu.memory_space<vmem>>, vector<32x64xbf16>
    %cst = arith.constant dense<0.000000e+00> : vector<8x64xf32>
    %2 = tpu.matmul %0, %1, %cst {dimension_numbers = #tpu.dot_dimension_numbers<[1], [0], [0], [1], [0, 0, 1, 1], [], []>} : vector<8x32xbf16>, vector<32x64xbf16>, vector<8x64xf32> -> vector<8x64xf32>
    %c0_3 = arith.constant 0 : index
    %c0_4 = arith.constant 0 : index
    %3 = vector.load %arg3[%c0_3, %c0_4] : memref<1x64xf32, #tpu.memory_space<vmem>>, vector<1x64xf32>
    %4 = vector.broadcast %3 : vector<1x64xf32> to vector<8x64xf32>
    %5 = arith.addf %2, %4 : vector<8x64xf32>
    %cst_5 = arith.constant dense<0xFF800000> : vector<8xf32>
    %6 = vector.multi_reduction <maximumf>, %5, %cst_5 [1] : vector<8x64xf32> to vector<8xf32>
    %7 = vector.shape_cast %6 : vector<8xf32> to vector<8x1xf32>
    %8 = vector.broadcast %7 : vector<8x1xf32> to vector<8x64xf32>
    %9 = arith.subf %5, %8 : vector<8x64xf32>
    %10 = math.exp %9 : vector<8x64xf32>
    %cst_6 = arith.constant dense<0.000000e+00> : vector<8xf32>
    %11 = vector.multi_reduction <add>, %10, %cst_6 [1] : vector<8x64xf32> to vector<8xf32>
    %12 = vector.shape_cast %11 : vector<8xf32> to vector<8x1xf32>
    %13 = vector.broadcast %12 : vector<8x1xf32> to vector<8x64xf32>
    %14 = arith.divf %10, %13 : vector<8x64xf32>
    %c0_7 = arith.constant 0 : index
    %c0_8 = arith.constant 0 : index
    %15 = vector.load %arg4[%c0_7, %c0_8] : memref<8x64xf32, #tpu.memory_space<vmem>>, vector<8x64xf32>
    tpu.vector_store %arg4[%c0_7, %c0_8], %14 {strides = array<i32>} : memref<8x64xf32, #tpu.memory_space<vmem>>, vector<8x64xf32>,
    return
  }
  func.func @transform_0(%arg0: i32) -> (i32, i32) {
    %c0_i32 = arith.constant 0 : i32
    %c0_i32_0 = arith.constant 0 : i32
    return %arg0, %c0_i32 : i32, i32
  }
  func.func @transform_1(%arg0: i32) -> (i32, i32) {
    %c0_i32 = arith.constant 0 : i32
    %c0_i32_0 = arith.constant 0 : i32
    %c0_i32_1 = arith.constant 0 : i32
    return %c0_i32, %c0_i32_0 : i32, i32
  }
  func.func @transform_2(%arg0: i32) -> (i32, i32) {
    %c0_i32 = arith.constant 0 : i32
    %c0_i32_0 = arith.constant 0 : i32
    %c0_i32_1 = arith.constant 0 : i32
    return %c0_i32, %c0_i32_0 : i32, i32
  }
  func.func @transform_3(%arg0: i32) -> (i32, i32) {
    %c0_i32 = arith.constant 0 : i32
    %c0_i32_0 = arith.constant 0 : i32
    return %arg0, %c0_i32 : i32, i32
  }
}

module attributes {stable_mosaic.version = 11 : i64} {
  func.func @_ffn_block_kernel(%arg0: i32, %arg1: i32, %arg2: memref<8x32xbf16, #tpu.memory_space<vmem>>, %arg3: memref<32x64xbf16, #tpu.memory_space<vmem>>, %arg4: memref<1x64xf32, #tpu.memory_space<vmem>>, %arg5: memref<64x32xbf16, #tpu.memory_space<vmem>>, %arg6: memref<1x32xf32, #tpu.memory_space<vmem>>, %arg7: memref<1x32xf32, #tpu.memory_space<vmem>>, %arg8: memref<1x32xf32, #tpu.memory_space<vmem>>, %arg9: memref<8x32xbf16, #tpu.memory_space<vmem>>, %arg10: memref<8x32xf32, #tpu.memory_space<vmem>>) attributes {dimension_semantics = [#tpu.dimension_semantics<parallel>, #tpu.dimension_semantics<arbitrary>], iteration_bounds = array<i64: 2, 1>, scalar_prefetch = 0 : i64, scratch_operands = 1 : i64, tpu.core_type = #tpu.core_type<tc>, window_params = [{transform_indices = @transform_0, window_bounds = array<i64: 8, 32>}, {transform_indices = @transform_1, window_bounds = array<i64: 32, 64>}, {transform_indices = @transform_2, window_bounds = array<i64: 1, 64>}, {transform_indices = @transform_3, window_bounds = array<i64: 64, 32>}, {pipeline_mode = #tpu.pipeline_mode<synchronous>, transform_indices = @transform_4, window_bounds = array<i64: 1, 32>}, {pipeline_mode = #tpu.pipeline_mode<synchronous>, transform_indices = @transform_5, window_bounds = array<i64: 1, 32>}, {pipeline_mode = #tpu.pipeline_mode<synchronous>, transform_indices = @transform_6, window_bounds = array<i64: 1, 32>}, {transform_indices = @transform_7, window_bounds = array<i64: 8, 32>}]} {
    %c0_i32 = arith.constant 0 : i32
    %0 = arith.cmpi eq, %arg1, %c0_i32 : i32
    %1 = arith.extui %0 : i1 to i32
    %c0_i32_0 = arith.constant 0 : i32
    %2 = arith.cmpi ne, %1, %c0_i32_0 : i32
    scf.if %2 {
      %cst_16 = arith.constant 0.000000e+00 : f32
      %20 = vector.broadcast %cst_16 : f32 to vector<8x32xf32>
      %c0_17 = arith.constant 0 : index
      %c0_18 = arith.constant 0 : index
      %21 = vector.load %arg10[%c0_17, %c0_18] : memref<8x32xf32, #tpu.memory_space<vmem>>, vector<8x32xf32>
      tpu.vector_store %arg10[%c0_17, %c0_18], %20 {strides = array<i32>} : memref<8x32xf32, #tpu.memory_space<vmem>>, vector<8x32xf32>,
    } else {
    }
    %c0 = arith.constant 0 : index
    %c0_1 = arith.constant 0 : index
    %3 = vector.load %arg2[%c0, %c0_1] : memref<8x32xbf16, #tpu.memory_space<vmem>>, vector<8x32xbf16>
    %c0_2 = arith.constant 0 : index
    %c0_3 = arith.constant 0 : index
    %4 = vector.load %arg3[%c0_2, %c0_3] : memref<32x64xbf16, #tpu.memory_space<vmem>>, vector<32x64xbf16>
    %cst = arith.constant dense<0.000000e+00> : vector<8x64xf32>
    %5 = tpu.matmul %3, %4, %cst {dimension_numbers = #tpu.dot_dimension_numbers<[1], [0], [0], [1], [0, 0, 1, 1], [], []>} : vector<8x32xbf16>, vector<32x64xbf16>, vector<8x64xf32> -> vector<8x64xf32>
    %c0_4 = arith.constant 0 : index
    %c0_5 = arith.constant 0 : index
    %6 = vector.load %arg4[%c0_4, %c0_5] : memref<1x64xf32, #tpu.memory_space<vmem>>, vector<1x64xf32>
    %7 = vector.broadcast %6 : vector<1x64xf32> to vector<8x64xf32>
    %8 = arith.addf %5, %7 : vector<8x64xf32>
    %cst_6 = arith.constant 0.000000e+00 : f32
    %9 = vector.broadcast %cst_6 : f32 to vector<8x64xf32>
    %10 = arith.maximumf %8, %9 : vector<8x64xf32>
    %c0_7 = arith.constant 0 : index
    %c0_8 = arith.constant 0 : index
    %11 = vector.load %arg10[%c0_7, %c0_8] : memref<8x32xf32, #tpu.memory_space<vmem>>, vector<8x32xf32>
    %12 = arith.truncf %10 : vector<8x64xf32> to vector<8x64xbf16>
    %c0_9 = arith.constant 0 : index
    %c0_10 = arith.constant 0 : index
    %13 = vector.load %arg5[%c0_9, %c0_10] : memref<64x32xbf16, #tpu.memory_space<vmem>>, vector<64x32xbf16>
    %cst_11 = arith.constant dense<0.000000e+00> : vector<8x32xf32>
    %14 = tpu.matmul %12, %13, %cst_11 {dimension_numbers = #tpu.dot_dimension_numbers<[1], [0], [0], [1], [0, 0, 1, 1], [], []>} : vector<8x64xbf16>, vector<64x32xbf16>, vector<8x32xf32> -> vector<8x32xf32>
    %15 = arith.addf %11, %14 : vector<8x32xf32>
    %c0_12 = arith.constant 0 : index
    %c0_13 = arith.constant 0 : index
    %16 = vector.load %arg10[%c0_12, %c0_13] : memref<8x32xf32, #tpu.memory_space<vmem>>, vector<8x32xf32>
    tpu.vector_store %arg10[%c0_12, %c0_13], %15 {strides = array<i32>} : memref<8x32xf32, #tpu.memory_space<vmem>>, vector<8x32xf32>,
    %c0_i32_14 = arith.constant 0 : i32
    %17 = arith.cmpi eq, %arg1, %c0_i32_14 : i32
    %18 = arith.extui %17 : i1 to i32
    %c0_i32_15 = arith.constant 0 : i32
    %19 = arith.cmpi ne, %18, %c0_i32_15 : i32
    scf.if %19 {
      %c0_16 = arith.constant 0 : index
      %c0_17 = arith.constant 0 : index
      %20 = vector.load %arg10[%c0_16, %c0_17] : memref<8x32xf32, #tpu.memory_space<vmem>>, vector<8x32xf32>
      %c0_18 = arith.constant 0 : index
      %c0_19 = arith.constant 0 : index
      %21 = vector.load %arg6[%c0_18, %c0_19] : memref<1x32xf32, #tpu.memory_space<vmem>>, vector<1x32xf32>
      %22 = vector.broadcast %21 : vector<1x32xf32> to vector<8x32xf32>
      %23 = arith.addf %20, %22 : vector<8x32xf32>
      %24 = arith.extf %3 : vector<8x32xbf16> to vector<8x32xf32>
      %25 = arith.addf %23, %24 : vector<8x32xf32>
      %c0_20 = arith.constant 0 : index
      %c0_21 = arith.constant 0 : index
      %26 = vector.load %arg7[%c0_20, %c0_21] : memref<1x32xf32, #tpu.memory_space<vmem>>, vector<1x32xf32>
      %c0_22 = arith.constant 0 : index
      %c0_23 = arith.constant 0 : index
      %27 = vector.load %arg8[%c0_22, %c0_23] : memref<1x32xf32, #tpu.memory_space<vmem>>, vector<1x32xf32>
      %cst_24 = arith.constant dense<0.000000e+00> : vector<8xf32>
      %28 = vector.multi_reduction <add>, %25, %cst_24 [1] : vector<8x32xf32> to vector<8xf32>
      %29 = vector.shape_cast %28 : vector<8xf32> to vector<8x1xf32>
      %cst_25 = arith.constant 3.200000e+01 : f32
      %30 = vector.broadcast %cst_25 : f32 to vector<8x1xf32>
      %31 = arith.divf %29, %30 : vector<8x1xf32>
      %32 = vector.broadcast %31 : vector<8x1xf32> to vector<8x32xf32>
      %33 = arith.subf %25, %32 : vector<8x32xf32>
      %34 = arith.mulf %33, %33 : vector<8x32xf32>
      %cst_26 = arith.constant dense<0.000000e+00> : vector<8xf32>
      %35 = vector.multi_reduction <add>, %34, %cst_26 [1] : vector<8x32xf32> to vector<8xf32>
      %36 = vector.shape_cast %35 : vector<8xf32> to vector<8x1xf32>
      %cst_27 = arith.constant 3.200000e+01 : f32
      %37 = vector.broadcast %cst_27 : f32 to vector<8x1xf32>
      %38 = arith.divf %36, %37 : vector<8x1xf32>
      %39 = vector.broadcast %31 : vector<8x1xf32> to vector<8x32xf32>
      %40 = arith.subf %25, %39 : vector<8x32xf32>
      %cst_28 = arith.constant 9.99999974E-6 : f32
      %41 = vector.broadcast %cst_28 : f32 to vector<8x1xf32>
      %42 = arith.addf %38, %41 : vector<8x1xf32>
      %43 = math.rsqrt %42 : vector<8x1xf32>
      %44 = vector.broadcast %43 : vector<8x1xf32> to vector<8x32xf32>
      %45 = arith.mulf %40, %44 : vector<8x32xf32>
      %46 = vector.broadcast %26 : vector<1x32xf32> to vector<8x32xf32>
      %47 = arith.mulf %45, %46 : vector<8x32xf32>
      %48 = vector.broadcast %27 : vector<1x32xf32> to vector<8x32xf32>
      %49 = arith.addf %47, %48 : vector<8x32xf32>
      %50 = arith.truncf %49 : vector<8x32xf32> to vector<8x32xbf16>
      %c0_29 = arith.constant 0 : index
      %c0_30 = arith.constant 0 : index
      %51 = vector.load %arg9[%c0_29, %c0_30] : memref<8x32xbf16, #tpu.memory_space<vmem>>, vector<8x32xbf16>
      tpu.vector_store %arg9[%c0_29, %c0_30], %50 {strides = array<i32>} : memref<8x32xbf16, #tpu.memory_space<vmem>>, vector<8x32xbf16>,
    } else {
    }
    return
  }
  func.func @transform_0(%arg0: i32, %arg1: i32) -> (i32, i32) {
    %c0_i32 = arith.constant 0 : i32
    %c0_i32_0 = arith.constant 0 : i32
    return %arg0, %c0_i32 : i32, i32
  }
  func.func @transform_1(%arg0: i32, %arg1: i32) -> (i32, i32) {
    %c0_i32 = arith.constant 0 : i32
    %c0_i32_0 = arith.constant 0 : i32
    return %c0_i32, %arg1 : i32, i32
  }
  func.func @transform_2(%arg0: i32, %arg1: i32) -> (i32, i32) {
    %c0_i32 = arith.constant 0 : i32
    %c0_i32_0 = arith.constant 0 : i32
    return %c0_i32, %arg1 : i32, i32
  }
  func.func @transform_3(%arg0: i32, %arg1: i32) -> (i32, i32) {
    %c0_i32 = arith.constant 0 : i32
    %c0_i32_0 = arith.constant 0 : i32
    return %arg1, %c0_i32 : i32, i32
  }
  func.func @transform_4(%arg0: i32, %arg1: i32) -> (i32, i32) {
    %c0_i32 = arith.constant 0 : i32
    %c0_i32_0 = arith.constant 0 : i32
    %c0_i32_1 = arith.constant 0 : i32
    return %c0_i32, %c0_i32_0 : i32, i32
  }
  func.func @transform_5(%arg0: i32, %arg1: i32) -> (i32, i32) {
    %c0_i32 = arith.constant 0 : i32
    %c0_i32_0 = arith.constant 0 : i32
    %c0_i32_1 = arith.constant 0 : i32
    return %c0_i32, %c0_i32_0 : i32, i32
  }
  func.func @transform_6(%arg0: i32, %arg1: i32) -> (i32, i32) {
    %c0_i32 = arith.constant 0 : i32
    %c0_i32_0 = arith.constant 0 : i32
    %c0_i32_1 = arith.constant 0 : i32
    return %c0_i32, %c0_i32_0 : i32, i32
  }
  func.func @transform_7(%arg0: i32, %arg1: i32) -> (i32, i32) {
    %c0_i32 = arith.constant 0 : i32
    %c0_i32_0 = arith.constant 0 : i32
    return %arg0, %c0_i32 : i32, i32
  }
}

</mosaic_0001>

<bundles_post_ra>
// kernel: decoder_forward.13
= control target key start
LH: loop header
LB: loop body
LE: loop exit
PB: predicated region body
PF: predicated region fallthrough
CT: control target
= control target key end

     0   :  { %8 = vsyncpa [#allocation3], 0  ;;  %s552_s0 = inlined_call_operand.vmem [shape: bf16[16,32], index: 0, kind: input, shape index: {}]   ;;  %s553_s1 = inlined_call_operand.vmem [shape: bf16[32,64], index: 1, kind: input, shape index: {}]   ;;  %s554_s2 = inlined_call_operand.vmem [shape: f32[1,64], index: 2, kind: input, shape index: {}]   ;;  %s555_s3 = inlined_call_operand.hbm [shape: f32[16,64], index: 3, kind: output, shape index: {}]  }
   0x1   :  { %10 = vsyncpa [#allocation3 + $0x1], 0  ;;  %s455_s12 = smov 0   ;;  %s457_s13 = smov 0  }
   0x2   :  { %s459_s14 = smov 0   ;;  %s461_s15 = smov 0  }
   0x3 LB: > { %s476_s16 = sadd.s32 4294967295, %s433_s15   ;;  %s306_s17 = sadd.s32 4294967294, %s433_s15   ;;  %s433_s15 = sphi %s461_s15, %s561_s15   ;;  %s429_s14 = sphi %s459_s14, %s560_s14   ;;  %s425_s13 = sphi %s457_s13, %s559_s13   ;;  %s421_s12 = sphi %s455_s12, %s558_s12  }
   0x4   : > { %s480_s18 = sadd.s32 1, %s433_s15   ;;  %s91_s19 = sadd.s32 1, %s429_s14 }
   0x5   : > { %s88_s20 = ssub.s32 %s433_s15, %s480_s18  ;;  %p101_p0 = scmp.ne.s32.totalorder %s429_s14, %s425_s13 }
   0x6   : > { %p89_p1 = scmp.eq.s32.totalorder %s88_s20, 0  ;;  %p102_p2 = scmp.eq.s32.totalorder %s476_s16, 1 }
   0x7   : > { %p107_p3 = scmp.ne.s32.totalorder %s425_s13, %s421_s12  ;;  %p108_p4 = scmp.eq.s32.totalorder %s306_s17, 1 }
   0x8   : > { %s491_s21 = scalar_select %p89_p1, %s429_s14, %s91_s19  }
   0x9   : > { %p493_p5 = por %p102_p2, %p101_p0  ;;  %p497_p6 = por %p108_p4, %p107_p3 }
   0xa   : > { %p309_p7 = scmp.ge.s32.totalorder %s433_s15, 1  ;;  %p139_p8 = scmp.lt.s32.totalorder %s433_s15, 3 }
   0xc   : > { %p140_p9 = pnand %p309_p7, %p139_p8 }
   0xd   : > { %p162_p10 = scmp.lt.s32.totalorder (!%p140_p9), %s476_s16, 1  ;;  %s159_s8 = sand.u32 (!%p140_p9), 1, %s425_s13  }
   0xe   : > { %143 = sbr.rel (%p140_p9) target bundleno = 422 (0x1a6), region = 32  ;;  %s310_s9 = sshll.u32 (!%p140_p9), %s159_s8, 3 }
   0xf   : > { %s322_s10 = sshll.u32 (!%p140_p9), %s476_s16, 3  ;;  %s161_s20 = scalar_lea.vmem (!%p140_p9), [#allocation2], %s310_s9 }
  0x10   : > { %s242_s19 = scalar_lea.hbm (!%p140_p9), %s555_s3, %s322_s10  ;;  %s244_s24 = sshll.u32 (!%p140_p9), %s161_s20, 4  ;;  %s245_s24 = int_to_ptr.vmem [resolvable:$true] %s244_s24 }
  0x11   : > { %s246_s25 = sshll.u32 (!%p140_p9), %s242_s19, 4  ;;  %s391_s30 = scalar_lea.hbm (!%p140_p9), %s555_s3, 16  ;;  %s247_s25 = int_to_ptr.hbm [resolvable:$true] %s246_s25 }
  0x12   : > { %s385_s26 = sshra.s32 (!%p140_p9), %s247_s25, 4  ;;  %s386_s26 = int_to_ptr.hbm [resolvable:$true] %s385_s26 }
  0x13   : > { %v326_v0 = vld [vmem:[%s553_s1 + $0x8] sm:$0xff]  ;;  %v325_v1 = vld [vmem:[%s553_s1] sm:$0xff]  ;;  %s163_s28 = scalar_select %p162_p10, %s476_s16, 1  ;;  %vm188_vm0 = vcmask 261120   ;;  %vm205_vm1 = vcmask 523264  }
  0x14   : > { %198 = vmatpush.bf16.msra.mxu0 %v326_v0  ;;  %v366_v3 = vld [vmem:[%s554_s2] ss:$0 sm:$0xff]  ;;  %s232_s16 = scalar_lea.sflag [#allocation3], %s159_s8  ;;  %s387_s27 = scalar_lea.hbm %s386_s26, 8 }
  0x15   : > { %s311_s29 = sshll.u32 %s163_s28, 2  ;;  %p388_p11 = scmp.ne.s32.totalorder %s386_s26, %s387_s27 }
  0x16   : > { %s165_s5 = scalar_lea.vmem %s552_s0, %s311_s29  ;;  %p392_p0 = scmp.lt.s32.totalorder %s386_s26, %s555_s3 }
  0x17   : > { %v167_v2 = vld [vmem:[%s165_s5] sm:$0xf]  ;;  %p389_p12 = pnand %p388_p11, %p493_p5  ;;  %p393_p1 = scmp.lt.s32.totalorder %s391_s30, %s387_s27 }
  0x18   : > { %199 = vmatpush.bf16.msra.mxu0 %v325_v1 }
  0x19   : > { %p390_p13 = pneg %p389_p12  ;;  %p394_p2 = por %p393_p1, %p392_p0 }
  0x1b   : > { %320 = vmatmul.msk.bf16.vlgmr.msra.gmra.mxu0 %vm188_vm0, %v167_v2  ;;  %p395_p3 = pnand %p394_p2, %p390_p13 }
  0x98   : > { %v201_v4 = vpop.f32.mrf.mxu0 }
  0x99   : > { %v202_v5 = vadd.f32 %v366_v3, %v201_v4 }
  0x9b   : > { %v206_v6 = vsel %vm205_vm1, %v202_v5, -inf }
  0x9c   : > { %207 = vmax.xlane.f32.xlu0 %v206_v6 }
  0xa0   : > { %v203_v7 = vpop.f32.mrf.mxu0 }
 0x10f   : > { %v208_v8 = vpop.xlane.xlu0 %207 }
 0x110   : > { %v209_v9 = vsub.f32 %v202_v5, %v208_v8 }
 0x112   : > { %v210_v10 = vmul.f32 1.442695, %v209_v9 }
 0x114   : > { %367 = vpow2.f32 %v210_v10 }
 0x11a   : > { %v368_v11 = vpop.eup %367 }
 0x11b   : > { %v212_v12 = vsel %vm205_vm1, %v368_v11, 0.0 }
 0x11c   : > { %213 = vadd.xlane.f32.xlu0 %v212_v12 }
 0x18f   : > { %v214_v13 = vpop.xlane.xlu0 %213 }
 0x190   : > { %369 = vrcp.f32 %v214_v13  ;;  %v226_v17 = vand.u32 2147483648, %v214_v13  ;;  %v224_v19 = vand.u32 2147483647, %v214_v13  ;;  %vm220_vm3 = vweird.f32 %v214_v13 }
 0x192   : > { %v227_v21 = vor.u32 1.1754944e-38, %v226_v17  ;;  %vm225_vm5 = vcmp.eq.f32.partialorder %v224_v19, 8.507059e+37 }
 0x196   : > { %v370_v14 = vpop.eup %369 }
 0x197   : > { %v216_v15 = vmul.f32 %v370_v14, %v214_v13  ;;  %vm221_vm2 = vweird.f32 %v370_v14 }
 0x198   : > { %vm222_vm4 = vmor %vm220_vm3, %vm221_vm2 }
 0x199   : > { %v217_v16 = vsub.f32 1.0, %v216_v15 }
 0x19b   : > { %v218_v18 = vmul.f32 %v370_v14, %v217_v16 }
 0x19d   : > { %v219_v20 = vadd.f32 %v370_v14, %v218_v18 }
 0x19f   : > { %v223_v22 = vsel %vm222_vm4, %v370_v14, %v219_v20 }
 0x1a0   : > { %v228_v23 = vsel %vm225_vm5, %v227_v21, %v223_v22 }
 0x1a1   : > { %v229_v24 = vmul.f32 %v368_v11, %v228_v23 }
 0x1a3   : > { %230 = vst.msk [vmem:[%s161_s20] sm:$0xff] %vm205_vm1, %v229_v24 }
 0x1a4   : > { %398 = shalt.err (!%p395_p3)
}
 0x1a5   : > { %327 = dma.vmem_to_hbm [thread:$0]  (%p493_p5), %s245_s24, 128, %s247_s25, %s232_s16  }
 0x1a6 PF: > { %p333_p4 = scmp.ge.s32.totalorder %s433_s15, 2  ;;  %s258_s6 = sand.u32 1, %s421_s12  }
 0x1a7   : > { %s259_s7 = scalar_lea.sflag [#allocation3], %s258_s6 }
 0x1a8   : > { %p330_p7 = pnand %p333_p4, %p497_p6 }
 0x1aa   : > { %p331_p8 = pneg %p330_p7 }
 0x1ac   : > { %416 = dma.done.wait (%p331_p8), %s259_s7, 128  }
 0x1ad   : > { %418 = vsyncadd (%p331_p8), %s259_s7, 4294967168  ;;  %p13_p9 = scmp.ge.s32.totalorder %s480_s18, 4   ;;  %s558_s12 = smov %s425_s13 }
 0x1ae   : > { %s559_s13 = smov %s429_s14  ;;  %s560_s14 = smov %s491_s21 }
 0x1af   : > { %s561_s15 = smov %s480_s18  ;;  %15 = sbr.rel (!%p13_p9) target bundleno = 3 (0x3), region = 67 }
 0x1b4   :  { %265 = vsyncpa [#allocation3], 1 }
 0x1b5   :  { %267 = vsyncpa [#allocation3 + $0x1], 1 }

// kernel: decoder_forward.9
= control target key start
LH: loop header
LB: loop body
LE: loop exit
PB: predicated region body
PF: predicated region fallthrough
CT: control target
= control target key end

     0   :  { %s739_s24 = smov 0   ;;  %s741_s25 = smov 0   ;;  %s814_s0 = inlined_call_operand.vmem [shape: bf16[16,32], index: 0, kind: input, shape index: {}]   ;;  %s815_s1 = inlined_call_operand.vmem [shape: bf16[32,64], index: 1, kind: input, shape index: {}]   ;;  %s816_s2 = inlined_call_operand.vmem [shape: f32[1,64], index: 2, kind: input, shape index: {}]   ;;  %s817_s3 = inlined_call_operand.vmem [shape: bf16[64,32], index: 3, kind: input, shape index: {}]   ;;  %s818_s4 = inlined_call_operand.vmem [shape: f32[1,32], index: 4, kind: input, shape index: {}]   ;;  %s819_s5 = inlined_call_operand.vmem [shape: f32[1,32], index: 5, kind: input, shape index: {}]   ;;  %s820_s6 = inlined_call_operand.vmem [shape: f32[1,32], index: 6, kind: input, shape index: {}]   ;;  %s821_s7 = inlined_call_operand.vmem [shape: bf16[16,32], index: 7, kind: output, shape index: {}]  }
   0x1   :  { %s743_s26 = smov 0  }
   0x2 LB: > { %s29_s27 = sadd.s32 1, %s691_s25  ;;  %p602_p0 = scmp.ge.s32.totalorder %s695_s26, 1  ;;  %s695_s26 = sphi %s743_s26, %s17_s26   ;;  %s691_s25 = sphi %s741_s25, %s823_s25   ;;  %s687_s24 = sphi %s739_s24, %s822_s24  }
   0x3   : > { %p31_p1 = scmp.ge.s32.totalorder %s29_s27, 2  ;;  %p276_p2 = scmp.lt.s32.totalorder %s695_s26, 3 }
   0x5   : > { %s825_s27 = smov (%p31_p1, %s29_s27), 0  ;;  %p277_p3 = pnand %p602_p0, %p276_p2 }
   0x6   : > { %p318_p4 = scmp.lt.s32.totalorder (!%p277_p3), %s687_s24, 1 }
   0x7   : > { %280 = sbr.rel (%p277_p3) target bundleno = 563 (0x233), region = 48 }
   0xc   : > { %v634_v0 = vld [vmem:[%s815_s1 + $0x8] sm:$0xff]  ;;  %v638_v1 = vld [vmem:[%s817_s3 + $0x18] sm:$0xff]  ;;  %v633_v2 = vld [vmem:[%s815_s1] sm:$0xff]  ;;  %s827_s24 = smov (!%p318_p4, %s687_s24), 1  ;;  %vm344_vm0 = vcmask 261120   ;;  %v697_v7 = vmov 0.0  }
   0xd   : > { %377 = vmatpush.bf16.msra.mxu0 %v634_v0  ;;  %427 = vmatpush.bf16.msra.mxu1 %v638_v1  ;;  %v637_v3 = vld [vmem:[%s817_s3 + $0x10] sm:$0xff]  ;;  %s603_s13 = sshll.u32 %s827_s24, 2  ;;  %v636_v5 = vld [vmem:[%s817_s3 + $0x8] sm:$0xff]  ;;  %v635_v6 = vld [vmem:[%s817_s3] sm:$0xff]  ;;  %345 = vst.msk [vmem:[#allocation2] sm:$0xff] %vm344_vm0, %v697_v7  ;;  %vm419_vm1 = vcmask 523264  }
   0xe   : > { %s321_s16 = scalar_lea.vmem %s814_s0, %s603_s13  ;;  %v665_v8 = vld [vmem:[%s816_s2] ss:$0 sm:$0xff]  ;;  %v698_v24 = vmov 32.0   ;;  %s338_s12 = scalar_lea.vmem %s821_s7, %s603_s13  ;;  %vm489_vm6 = vcmask 257024  }
   0xf   : > { %v346_v4 = vld [vmem:[%s321_s16] sm:$0xf]  ;;  %669 = vrcp.f32 %v698_v24 }
  0x10   : > { %v666_v17 = vld [vmem:[%s818_s4] ss:$0 sm:$0xff]  ;;  %v447_v19 = vunpack.c.l.bf16 %v346_v4 }
  0x11   : > { %378 = vmatpush.bf16.msra.mxu0 %v633_v2  ;;  %428 = vmatpush.bf16.msra.mxu1 %v637_v3  ;;  %v667_v45 = vld [vmem:[%s819_s5] ss:$0 sm:$0xff] }
  0x12   : > { %v668_v47 = vld [vmem:[%s820_s6] ss:$0 sm:$0xff] }
  0x14   : > { %613 = vmatmul.msk.bf16.vlgmr.msra.gmra.mxu0 %vm344_vm0, %v346_v4  ;;  %v385_v14 = vld [vmem:[#allocation2] sm:$0xff] }
  0x15   : > { %429 = vmatpush.bf16.msra.mxu1 %v636_v5  ;;  %v670_v25 = vpop.eup %669 }
  0x16   : > { %v455_v26 = vmul.f32 32.0, %v670_v25  ;;  %vm459_vm2 = vweird.f32 %v670_v25 }
  0x18   : > { %v456_v27 = vsub.f32 1.0, %v455_v26 }
  0x19   : > { %430 = vmatpush.bf16.msra.mxu1 %v635_v6 }
  0x1a   : > { %v457_v28 = vmul.f32 %v670_v25, %v456_v27 }
  0x1c   : > { %v458_v29 = vadd.f32 %v670_v25, %v457_v28 }
  0x1e   : > { %v460_v30 = vsel %vm459_vm2, %v670_v25, %v458_v29 }
  0x91   : > { %v380_v9 = vpop.f32.mrf.mxu0 }
  0x92   : > { %v381_v10 = vadd.f32 %v665_v8, %v380_v9 }
  0x94   : > { %v384_v11 = vmax.f32 %v381_v10, 0.0 }
  0x96   : > { %v386_v12 = vpack.c.bf16 %v384_v11, %v384_v11 }
  0x98   : > { %630 = vmatmul.msk.bf16.vlgmr.msra.gmra.mxu1 %vm419_vm1, %v386_v12 }
  0x99   : > { %v382_v13 = vpop.f32.mrf.mxu0 }
 0x115   : > { %v432_v15 = vpop.f32.mrf.mxu1 }
 0x116   : > { %v436_v16 = vadd.f32 %v432_v15, %v385_v14 }
 0x118   : > { %437 = vst.msk [vmem:[#allocation2] sm:$0xff] %vm344_vm0, %v436_v16 }
 0x11d   : > { %v434_v18 = vpop.f32.mrf.mxu1 }
 0x11f   : > { %v441_v20 = vld [vmem:[#allocation2] sm:$0xff] }
 0x120   : > { %v446_v21 = vadd.f32 %v666_v17, %v441_v20 }
 0x122   : > { %v448_v22 = vadd.f32 %v447_v19, %v446_v21 }
 0x124   : > { %v451_v23 = vsel %vm344_vm0, %v448_v22, 0.0 }
 0x125   : > { %452 = vadd.xlane.f32.xlu0 %v451_v23 }
 0x198   : > { %v453_v31 = vpop.xlane.xlu0 %452 }
 0x199   : > { %v461_v32 = vmul.f32 %v460_v30, %v453_v31 }
 0x19b   : > { %v462_v33 = vsub.f32 %v448_v22, %v461_v32 }
 0x19d   : > { %v463_v34 = vmul.f32 %v462_v33, %v462_v33 }
 0x19f   : > { %v464_v35 = vsel %vm344_vm0, %v463_v34, 0.0 }
 0x1a0   : > { %465 = vadd.xlane.f32.xlu0 %v464_v35 }
 0x213   : > { %v466_v36 = vpop.xlane.xlu0 %465 }
 0x214   : > { %v467_v37 = vmul.f32 %v466_v36, %v460_v30 }
 0x216   : > { %v468_v38 = vadd.f32 1e-05, %v467_v37 }
 0x218   : > { %671 = vrsqrt.f32 %v468_v38  ;;  %vm475_vm4 = vweird.f32 %v468_v38 }
 0x21e   : > { %v672_v39 = vpop.eup %671 }
 0x21f   : > { %v470_v40 = vmul.f32 %v672_v39, %v468_v38  ;;  %vm476_vm3 = vweird.f32 %v672_v39 }
 0x220   : > { %vm477_vm5 = vmor %vm475_vm4, %vm476_vm3 }
 0x221   : > { %v471_v41 = vmul.f32 %v672_v39, %v470_v40 }
 0x223   : > { %v472_v42 = vmul.f32 0.5, %v471_v41 }
 0x225   : > { %v473_v43 = vsub.f32 1.5, %v472_v42 }
 0x227   : > { %v474_v44 = vmul.f32 %v672_v39, %v473_v43 }
 0x229   : > { %v478_v46 = vsel %vm477_vm5, %v672_v39, %v474_v44 }
 0x22a   : > { %v479_v48 = vmul.f32 %v478_v46, %v462_v33 }
 0x22c   : > { %v483_v49 = vmul.f32 %v667_v45, %v479_v48 }
 0x22e   : > { %v487_v50 = vadd.f32 %v668_v47, %v483_v49 }
 0x230   : > { %v488_v51 = vpack.c.bf16 %v487_v50, %v487_v50 }
 0x232   : > { %490 = vst.msk [vmem:[%s338_s12] sm:$0xf] %vm489_vm6, %v488_v51 }
 0x233 PF: > { %s17_s26 = sadd.s32 1, %s695_s26   ;;  %s822_s24 = smov %s691_s25 }
 0x234   : > { %p14_p5 = scmp.ge.s32.totalorder %s17_s26, 4   ;;  %s823_s25 = smov %s825_s27 }
 0x236   :  { %16 = sbr.rel (!%p14_p5) target bundleno = 2 (0x2), region = 95 }

// kernel: decoder_forward.7
= control target key start
LH: loop header
LB: loop body
LE: loop exit
PB: predicated region body
PF: predicated region fallthrough
CT: control target
= control target key end

     0   :  { %s1118_s17 = smov 0   ;;  %s1120_s18 = smov 0   ;;  %s1245_s0 = inlined_call_operand.vmem [shape: bf16[16,32], index: 0, kind: input, shape index: {}]   ;;  %s1246_s1 = inlined_call_operand.vmem [shape: bf16[4,32,8], index: 1, kind: input, shape index: {}]   ;;  %s1247_s2 = inlined_call_operand.vmem [shape: f32[4,1,8], index: 2, kind: input, shape index: {}]   ;;  %s1248_s3 = inlined_call_operand.vmem [shape: bf16[4,32,8], index: 3, kind: input, shape index: {}]   ;;  %s1249_s4 = inlined_call_operand.vmem [shape: f32[4,1,8], index: 4, kind: input, shape index: {}]   ;;  %s1250_s5 = inlined_call_operand.vmem [shape: bf16[4,32,8], index: 5, kind: input, shape index: {}]   ;;  %s1251_s6 = inlined_call_operand.vmem [shape: f32[4,1,8], index: 6, kind: input, shape index: {}]   ;;  %s1252_s7 = inlined_call_operand.vmem [shape: bf16[4,8,32], index: 7, kind: input, shape index: {}]   ;;  %s1253_s8 = inlined_call_operand.vmem [shape: f32[1,32], index: 8, kind: input, shape index: {}]   ;;  %s1254_s9 = inlined_call_operand.vmem [shape: f32[1,32], index: 9, kind: input, shape index: {}]   ;;  %s1255_s10 = inlined_call_operand.vmem [shape: f32[1,32], index: 10, kind: input, shape index: {}]   ;;  %s1256_s11 = inlined_call_operand.vmem [shape: bf16[16,32], index: 11, kind: output, shape index: {}]  }
   0x1   :  { %1260 = sst [smem:[#allocation8_spill]] %s1245_s0  ;;  %s1122_s19 = smov 0  }
   0x2   :  { %1261 = sst [smem:[#allocation9_spill]] %s1246_s1  ;;  %s1124_s20 = smov 0  }
   0x3   :  { %1262 = sst [smem:[#allocation10_spill]] %s1247_s2  ;;  %s1126_s21 = smov 0  }
   0x4   :  { %1263 = sst [smem:[#allocation11_spill]] %s1255_s10 }
   0x5 LB: > { %1264 = sst [smem:[#allocation3_spill]] %s1046_s19  ;;  %s30_s22 = sadd.s32 1, %s1046_s19  ;;  %s1054_s21 = sphi %s1126_s21, %s21_s21   ;;  %s1050_s20 = sphi %s1124_s20, %s1277_s20   ;;  %s1046_s19 = sphi %s1122_s19, %s1276_s19   ;;  %s1042_s18 = sphi %s1120_s18, %s1275_s18   ;;  %s1038_s17 = sphi %s1118_s17, %s1274_s17  }
   0x6   : > { %1265 = sst [smem:[#allocation4_spill]] %s1050_s20  ;;  %s33_s23 = sadd.s32 1, %s1050_s20 }
   0x7   : > { %1266 = sst [smem:[#allocation5_spill]] %s1054_s21  ;;  %p31_p0 = scmp.ge.s32.totalorder %s30_s22, 4 }
   0x8   : > { %p907_p1 = scmp.ge.s32.totalorder %s1054_s21, 1  ;;  %p411_p2 = scmp.lt.s32.totalorder %s1054_s21, 9 }
   0x9   : > { %s1279_s22 = smov (%p31_p0, %s30_s22), 0  ;;  %s1281_s23 = smov (!%p31_p0, %s33_s23), %s1050_s20 }
   0xa   : > { %1267 = sst [smem:[#allocation6_spill]] %s1279_s22  ;;  %p412_p3 = pnand %p907_p1, %p411_p2 }
   0xb   : > { %p35_p4 = scmp.ge.s32.totalorder %s1281_s23, 2  ;;  %p477_p5 = scmp.lt.s32.totalorder (!%p412_p3), %s1042_s18, 1 }
   0xc   : > { %415 = sbr.rel (%p412_p3) target bundleno = 1109 (0x455), region = 64  ;;  %p481_p6 = scmp.lt.s32.totalorder (!%p412_p3), %s1038_s17, 3 }
   0xd   : > { %s1283_s23 = smov (%p35_p4, %s1281_s23), 0  ;;  %s1269_s0 = sld [smem:[#allocation8_spill]] (!%p412_p3) }
   0xe   : > { %1268 = sst [smem:[#allocation7_spill]] %s1283_s23  ;;  %p917_p7 = scmp.ne.s32.totalorder (!%p412_p3), %s1038_s17, 0 }
   0xf   : > { %s1270_s1 = sld [smem:[#allocation9_spill]] (!%p412_p3) }
  0x10   : > { %s1271_s2 = sld [smem:[#allocation10_spill]] (!%p412_p3) }
  0x11   : > { %s1285_s18 = smov (!%p477_p5, %s1042_s18), 1 }
  0x12   : > { %s1152_s24 = scalar_select %p481_p6, %s1038_s17, 3 }
  0x13   : > { %s908_s25 = sshll.u32 %s1285_s18, 2 }
  0x14   : > { %s480_s28 = scalar_lea.vmem %s1269_s0, %s908_s25  ;;  %s951_s29 = sshll.u32 %s1152_s24, 4 }
  0x15   : > { %s485_s13 = scalar_lea.vmem %s1270_s1, %s951_s29  ;;  %s493_s20 = scalar_lea.vmem %s1248_s3, %s951_s29 }
  0x16   : > { %s488_s16 = scalar_lea.vmem %s1271_s2, %s1152_s24  ;;  %s496_s18 = scalar_lea.vmem %s1249_s4, %s1152_s24 }
  0x17   : > { %s1175_s27 = scalar_lea.vmem %s1250_s5, %s951_s29  ;;  %s504_s12 = scalar_lea.vmem %s1251_s6, %s1152_s24 }
  0x18   : > { %s915_s1 = sshll.u32 %s1152_s24, 2  ;;  %s1185_s2 = scalar_lea.vmem %s1256_s11, %s908_s25 }
  0x19   : > { %s1190_s19 = scalar_lea.vmem %s1252_s7, %s915_s1  ;;  %517 = sbr.rel (%p917_p7) target bundleno = 32 (0x20), region = 68 }
  0x1e   : > { %vm518_vm0 = vcmask 261120   ;;  %v1056_v0 = vmov 0.0  }
  0x1f   : > { %519 = vst.msk [vmem:[#allocation2] sm:$0xff] %vm518_vm0, %v1056_v0 }
  0x20 PF: > { %v955_v1 = vld [vmem:[%s485_s13 + $0x8] sm:$0xff]  ;;  %v954_v3 = vld [vmem:[%s485_s13] sm:$0xff]  ;;  %vm551_vm1 = vcmask 261120   ;;  %vm626_vm2 = vcmask 64512   ;;  %v647_v19 = vlaneseq  ;;  %vm669_vm4 = vcmask 1043456   ;;  %p948_p8 = scmp.ne.s32.totalorder %s1038_s17, 3 }
  0x21   : > { %v957_v2 = vld [vmem:[%s493_s20 + $0x8] sm:$0xff]  ;;  %561 = vmatpush.bf16.msra.mxu0 %v955_v1  ;;  %v956_v4 = vld [vmem:[%s493_s20] sm:$0xff] }
  0x22   : > { %589 = vmatpush.bf16.msra.mxu1 %v957_v2  ;;  %v1193_v5 = vld [vmem:[%s480_s28] sm:$0xf]  ;;  %v959_v17 = vld [vmem:[%s1175_s27 + $0x8] sm:$0xff]  ;;  %v648_v20 = vshrl.u32 %v647_v19, 7  ;;  %v650_v21 = vand.u32 127, %v647_v19  ;;  %s1272_s28 = sld [smem:[#allocation11_spill]] (!%p948_p8) }
  0x23   : > { %v1003_v6 = vld [vmem:[%s496_s18] ss:$0 sm:$0xff]  ;;  %617 = vmatpush.bf16.msra.mxu2 %v959_v17 }
  0x24   : > { %v1002_v9 = vld [vmem:[%s488_s16] ss:$0 sm:$0xff]  ;;  %vm651_vm3 = vcmp.le.s32.totalorder %v650_v21, %v648_v20 }
  0x25   : > { %562 = vmatpush.bf16.msra.mxu0 %v954_v3  ;;  %v958_v18 = vld [vmem:[%s1175_s27] sm:$0xff] }
  0x26   : > { %590 = vmatpush.bf16.msra.mxu1 %v956_v4  ;;  %v1004_v27 = vld [vmem:[%s504_s12] ss:$0 sm:$0xff] }
  0x27   : > { %618 = vmatpush.bf16.msra.mxu2 %v958_v18  ;;  %v686_v38 = vld [vmem:[%s1190_s19] sm:$0xf] }
  0x28   : > { %926 = vmatmul.msk.bf16.vlgmr.msra.gmra.mxu0 %vm551_vm1, %v1193_v5  ;;  %v693_v39 = vsel %vm669_vm4, %v686_v38, 0  ;;  %v687_v47 = vld [vmem:[#allocation2] sm:$0xff] }
  0x29   : > { %935 = vmatmul.msk.bf16.vlgmr.msra.gmra.mxu1 %vm551_vm1, %v1193_v5 }
  0x2a   : > { %944 = vmatmul.msk.bf16.vlgmr.msra.gmra.mxu2 %vm551_vm1, %v1193_v5  ;;  %702 = vmatpush.bf16.msrb.mxu1 %v693_v39 }
  0xa5   : > { %v564_v7 = vpop.f32.mrf.mxu0 }
  0xa6   : > { %v592_v8 = vpop.f32.mrf.mxu1  ;;  %v565_v12 = vadd.f32 %v1002_v9, %v564_v7 }
  0xa7   : > { %v593_v10 = vadd.f32 %v1003_v6, %v592_v8 }
  0xa8   : > { %v624_v16 = vpack.c.bf16 %v565_v12, %v565_v12 }
  0xa9   : > { %v625_v11 = vpack.c.bf16 %v593_v10, %v593_v10 }
  0xab   : > { %v631_v13 = vsel %vm626_vm2, %v625_v11, 0 }
  0xac   : > { %640 = vmatpush.bf16.xpose.msra.mxu3 %v631_v13 }
  0xad   : > { %v566_v14 = vpop.f32.mrf.mxu0  ;;  %v620_v28 = vpop.f32.mrf.mxu2 }
  0xae   : > { %v594_v15 = vpop.f32.mrf.mxu1  ;;  %v621_v29 = vadd.f32 %v1004_v27, %v620_v28 }
  0xb0   : > { %v665_v30 = vpack.c.bf16 %v621_v29, %v621_v29 }
  0xb2   : > { %v671_v33 = vsel %vm669_vm4, %v665_v30, 0 }
  0xb3   : > { %945 = vmatmul.msk.bf16.vlgmr.msra.gmra.mxu3 %vm626_vm2, %v624_v16  ;;  %680 = vmatpush.bf16.msrb.mxu0 %v671_v33 }
  0xb5   : > { %v622_v35 = vpop.f32.mrf.mxu2 }
 0x136   : > { %v642_v22 = vpop.f32.mrf.mxu3 }
 0x137   : > { %v646_v23 = vmul.f32 0.35355338, %v642_v22 }
 0x139   : > { %v652_v24 = vsel %vm651_vm3, %v646_v23, -1e+09 }
 0x13a   : > { %v653_v25 = vsel %vm626_vm2, %v652_v24, -inf }
 0x13b   : > { %654 = vmax.xlane.f32.xlu0 %v653_v25 }
 0x13e   : > { %v644_v26 = vpop.f32.mrf.mxu3 }
 0x1ae   : > { %v655_v31 = vpop.xlane.xlu0 %654 }
 0x1af   : > { %v656_v32 = vsub.f32 %v652_v24, %v655_v31 }
 0x1b1   : > { %v657_v34 = vmul.f32 1.442695, %v656_v32 }
 0x1b3   : > { %1005 = vpow2.f32 %v657_v34 }
 0x1b9   : > { %v1006_v36 = vpop.eup %1005 }
 0x1ba   : > { %v659_v37 = vsel %vm626_vm2, %v1006_v36, 0.0 }
 0x1bb   : > { %660 = vadd.xlane.f32.xlu0 %v659_v37 }
 0x22e   : > { %v661_v40 = vpop.xlane.xlu0 %660 }
 0x22f   : > { %1007 = vrcp.f32 %v661_v40 }
 0x235   : > { %v1008_v41 = vpop.eup %1007 }
 0x236   : > { %v663_v42 = vmul.f32 %v1008_v41, %v1006_v36 }
 0x238   : > { %v664_v43 = vpack.c.bf16 %v663_v42, %v663_v42 }
 0x23a   : > { %946 = vmatmul.msk.bf16.vlgmr.msrb.gmra.mxu0 %vm626_vm2, %v664_v43 }
 0x2b7   : > { %v682_v44 = vpop.f32.mrf.mxu0 }
 0x2b8   : > { %v688_v45 = vpack.c.bf16 %v682_v44, %v682_v44 }
 0x2ba   : > { %947 = vmatmul.msk.bf16.vlgmr.msrb.gmra.mxu1 %vm626_vm2, %v688_v45 }
 0x2bf   : > { %v684_v46 = vpop.f32.mrf.mxu0 }
 0x337   : > { %v704_v48 = vpop.f32.mrf.mxu1 }
 0x338   : > { %v708_v49 = vadd.f32 %v704_v48, %v687_v47 }
 0x33a   : > { %709 = vst.msk [vmem:[#allocation2] sm:$0xff] %vm551_vm1, %v708_v49 }
 0x33b   : > { %713 = sbr.rel (%p948_p8) target bundleno = 1109 (0x455), region = 72 }
 0x33f   : > { %v706_v50 = vpop.f32.mrf.mxu1 }
 0x340   : > { %v1009_v52 = vld [vmem:[%s1253_s8] ss:$0 sm:$0xff]  ;;  %v720_v53 = vunpack.c.l.bf16 %v1193_v5  ;;  %v1057_v57 = vmov 32.0   ;;  %vm762_vm9 = vcmask 257024  }
 0x341   : > { %v714_v51 = vld [vmem:[#allocation2] sm:$0xff]  ;;  %1012 = vrcp.f32 %v1057_v57 }
 0x342   : > { %v719_v54 = vadd.f32 %v1009_v52, %v714_v51  ;;  %v1010_v14 = vld [vmem:[%s1254_s9] ss:$0 sm:$0xff] }
 0x343   : > { %v1011_v16 = vld [vmem:[%s1272_s28] ss:$0 sm:$0xff] }
 0x344   : > { %v721_v55 = vadd.f32 %v720_v53, %v719_v54 }
 0x346   : > { %v724_v56 = vsel %vm551_vm1, %v721_v55, 0.0 }
 0x347   : > { %725 = vadd.xlane.f32.xlu0 %v724_v56  ;;  %v1013_v58 = vpop.eup %1012 }
 0x348   : > { %v728_v59 = vmul.f32 32.0, %v1013_v58  ;;  %vm732_vm5 = vweird.f32 %v1013_v58 }
 0x34a   : > { %v729_v60 = vsub.f32 1.0, %v728_v59 }
 0x34c   : > { %v730_v61 = vmul.f32 %v1013_v58, %v729_v60 }
 0x34e   : > { %v731_v62 = vadd.f32 %v1013_v58, %v730_v61 }
 0x350   : > { %v733_v63 = vsel %vm732_vm5, %v1013_v58, %v731_v62 }
 0x3ba   : > { %v726_v0 = vpop.xlane.xlu0 %725 }
 0x3bb   : > { %v734_v1 = vmul.f32 %v733_v63, %v726_v0 }
 0x3bd   : > { %v735_v2 = vsub.f32 %v721_v55, %v734_v1 }
 0x3bf   : > { %v736_v3 = vmul.f32 %v735_v2, %v735_v2 }
 0x3c1   : > { %v737_v4 = vsel %vm551_vm1, %v736_v3, 0.0 }
 0x3c2   : > { %738 = vadd.xlane.f32.xlu0 %v737_v4 }
 0x435   : > { %v739_v5 = vpop.xlane.xlu0 %738 }
 0x436   : > { %v740_v6 = vmul.f32 %v739_v5, %v733_v63 }
 0x438   : > { %v741_v7 = vadd.f32 1e-05, %v740_v6 }
 0x43a   : > { %1014 = vrsqrt.f32 %v741_v7  ;;  %vm748_vm7 = vweird.f32 %v741_v7 }
 0x440   : > { %v1015_v8 = vpop.eup %1014 }
 0x441   : > { %v743_v9 = vmul.f32 %v1015_v8, %v741_v7  ;;  %vm749_vm6 = vweird.f32 %v1015_v8 }
 0x442   : > { %vm750_vm8 = vmor %vm748_vm7, %vm749_vm6 }
 0x443   : > { %v744_v10 = vmul.f32 %v1015_v8, %v743_v9 }
 0x445   : > { %v745_v11 = vmul.f32 0.5, %v744_v10 }
 0x447   : > { %v746_v12 = vsub.f32 1.5, %v745_v11 }
 0x449   : > { %v747_v13 = vmul.f32 %v1015_v8, %v746_v12 }
 0x44b   : > { %v751_v15 = vsel %vm750_vm8, %v1015_v8, %v747_v13 }
 0x44c   : > { %v752_v17 = vmul.f32 %v751_v15, %v735_v2 }
 0x44e   : > { %v756_v18 = vmul.f32 %v1010_v14, %v752_v17 }
 0x450   : > { %v760_v19 = vadd.f32 %v1011_v16, %v756_v18 }
 0x452   : > { %v761_v20 = vpack.c.bf16 %v760_v19, %v760_v19 }
 0x454   : > { %763 = vst.msk [vmem:[%s1185_s2] sm:$0xf] %vm762_vm9, %v761_v20 }
 0x455 PF: > { %s1273_s29 = sld [smem:[#allocation5_spill]] }
 0x456   : > { %s1274_s17 = sld [smem:[#allocation3_spill]] }
 0x457   : > { %s1275_s18 = sld [smem:[#allocation4_spill]] }
 0x458   : > { %s1276_s19 = sld [smem:[#allocation6_spill]] }
 0x459   : > { %s1277_s20 = sld [smem:[#allocation7_spill]] }
 0x45b   : > { %s21_s21 = sadd.s32 1, %s1273_s29  }
 0x45c   : > { %p18_p9 = scmp.ge.s32.totalorder %s21_s21, 10  }
 0x45e   :  { %20 = sbr.rel (!%p18_p9) target bundleno = 5 (0x5), region = 123 }

// kernel: decoder_forward.8
= control target key start
LH: loop header
LB: loop body
LE: loop exit
PB: predicated region body
PF: predicated region fallthrough
CT: control target
= control target key end

     0   :  { %s1178_s21 = smov 0   ;;  %s1180_s22 = smov 0   ;;  %s1318_s0 = inlined_call_operand.vmem [shape: bf16[16,32], index: 0, kind: input, shape index: {}]   ;;  %s1319_s1 = inlined_call_operand.vmem [shape: bf16[16,32], index: 1, kind: input, shape index: {}]   ;;  %s1320_s2 = inlined_call_operand.vmem [shape: bf16[4,32,8], index: 2, kind: input, shape index: {}]   ;;  %s1321_s3 = inlined_call_operand.vmem [shape: f32[4,1,8], index: 3, kind: input, shape index: {}]   ;;  %s1322_s4 = inlined_call_operand.vmem [shape: bf16[4,32,8], index: 4, kind: input, shape index: {}]   ;;  %s1323_s5 = inlined_call_operand.vmem [shape: f32[4,1,8], index: 5, kind: input, shape index: {}]   ;;  %s1324_s6 = inlined_call_operand.vmem [shape: bf16[4,32,8], index: 6, kind: input, shape index: {}]   ;;  %s1325_s7 = inlined_call_operand.vmem [shape: f32[4,1,8], index: 7, kind: input, shape index: {}]   ;;  %s1326_s8 = inlined_call_operand.vmem [shape: bf16[4,8,32], index: 8, kind: input, shape index: {}]   ;;  %s1327_s9 = inlined_call_operand.vmem [shape: f32[1,32], index: 9, kind: input, shape index: {}]   ;;  %s1328_s10 = inlined_call_operand.vmem [shape: f32[1,32], index: 10, kind: input, shape index: {}]   ;;  %s1329_s11 = inlined_call_operand.vmem [shape: f32[1,32], index: 11, kind: input, shape index: {}]   ;;  %s1330_s12 = inlined_call_operand.vmem [shape: bf16[16,32], index: 12, kind: output, shape index: {}]  }
   0x1   :  { %1334 = sst [smem:[#allocation8_spill]] %s1318_s0  ;;  %s1182_s23 = smov 0  }
   0x2   :  { %1335 = sst [smem:[#allocation9_spill]] %s1319_s1  ;;  %s1184_s24 = smov 0  }
   0x3   :  { %1336 = sst [smem:[#allocation10_spill]] %s1320_s2  ;;  %s1186_s25 = smov 0  }
   0x4   :  { %1337 = sst [smem:[#allocation11_spill]] %s1328_s10 }
   0x5   :  { %1338 = sst [smem:[#allocation12_spill]] %s1329_s11 }
   0x6 LB: > { %1339 = sst [smem:[#allocation3_spill]] %s1101_s23  ;;  %s31_s26 = sadd.s32 1, %s1101_s23  ;;  %s1109_s25 = sphi %s1186_s25, %s22_s25   ;;  %s1105_s24 = sphi %s1184_s24, %s1354_s24   ;;  %s1101_s23 = sphi %s1182_s23, %s1353_s23   ;;  %s1097_s22 = sphi %s1180_s22, %s1352_s22   ;;  %s1093_s21 = sphi %s1178_s21, %s1351_s21  }
   0x7   : > { %1340 = sst [smem:[#allocation4_spill]] %s1105_s24  ;;  %s34_s27 = sadd.s32 1, %s1105_s24 }
   0x8   : > { %1341 = sst [smem:[#allocation5_spill]] %s1109_s25  ;;  %p32_p0 = scmp.ge.s32.totalorder %s31_s26, 4 }
   0x9   : > { %p961_p1 = scmp.ge.s32.totalorder %s1109_s25, 1  ;;  %p445_p2 = scmp.lt.s32.totalorder %s1109_s25, 9 }
   0xa   : > { %s1356_s26 = smov (%p32_p0, %s31_s26), 0  ;;  %s1358_s27 = smov (!%p32_p0, %s34_s27), %s1105_s24 }
   0xb   : > { %1342 = sst [smem:[#allocation6_spill]] %s1356_s26  ;;  %p446_p3 = pnand %p961_p1, %p445_p2 }
   0xc   : > { %p36_p4 = scmp.ge.s32.totalorder %s1358_s27, 2  ;;  %p517_p5 = scmp.lt.s32.totalorder (!%p446_p3), %s1097_s22, 1 }
   0xd   : > { %449 = sbr.rel (%p446_p3) target bundleno = 1109 (0x455), region = 68  ;;  %p525_p6 = scmp.lt.s32.totalorder (!%p446_p3), %s1093_s21, 3 }
   0xe   : > { %s1360_s27 = smov (%p36_p4, %s1358_s27), 0  ;;  %s1344_s0 = sld [smem:[#allocation8_spill]] (!%p446_p3) }
   0xf   : > { %1343 = sst [smem:[#allocation7_spill]] %s1360_s27  ;;  %p972_p7 = scmp.ne.s32.totalorder (!%p446_p3), %s1093_s21, 0 }
  0x10   : > { %s1345_s1 = sld [smem:[#allocation9_spill]] (!%p446_p3) }
  0x11   : > { %s1346_s2 = sld [smem:[#allocation10_spill]] (!%p446_p3) }
  0x12   : > { %s1362_s22 = smov (!%p517_p5, %s1097_s22), 1 }
  0x13   : > { %s1212_s28 = scalar_select %p525_p6, %s1093_s21, 3 }
  0x14   : > { %s1214_s29 = sshll.u32 %s1362_s22, 2 }
  0x15   : > { %s520_s14 = scalar_lea.vmem %s1344_s0, %s1214_s29  ;;  %s1006_s18 = sshll.u32 %s1212_s28, 4 }
  0x16   : > { %s524_s17 = scalar_lea.vmem %s1345_s1, %s1214_s29  ;;  %s537_s30 = scalar_lea.vmem %s1322_s4, %s1006_s18 }
  0x17   : > { %s529_s22 = scalar_lea.vmem %s1346_s2, %s1006_s18  ;;  %s540_s0 = scalar_lea.vmem %s1323_s5, %s1212_s28 }
  0x18   : > { %s1242_s16 = scalar_lea.vmem %s1324_s6, %s1006_s18  ;;  %s548_s20 = scalar_lea.vmem %s1325_s7, %s1212_s28 }
  0x19   : > { %s970_s27 = sshll.u32 %s1212_s28, 2  ;;  %s556_s11 = scalar_lea.vmem %s1330_s12, %s1214_s29 }
  0x1a   : > { %s1252_s2 = scalar_lea.vmem %s1326_s8, %s970_s27  ;;  %561 = sbr.rel (%p972_p7) target bundleno = 33 (0x21), region = 72 }
  0x1f   : > { %vm562_vm0 = vcmask 261120   ;;  %v1111_v0 = vmov 0.0  }
  0x20   : > { %563 = vst.msk [vmem:[#allocation2] sm:$0xff] %vm562_vm0, %v1111_v0 }
  0x21 PF: > { %v1010_v1 = vld [vmem:[%s529_s22 + $0x8] sm:$0xff]  ;;  %v1009_v3 = vld [vmem:[%s529_s22] sm:$0xff]  ;;  %vm596_vm1 = vcmask 261120   ;;  %s1347_s27 = scalar_lea.vmem %s1321_s3, %s1212_s28  ;;  %vm674_vm2 = vcmask 64512   ;;  %vm711_vm3 = vcmask 1043456   ;;  %p1003_p8 = scmp.ne.s32.totalorder %s1093_s21, 3 }
  0x22   : > { %v1012_v2 = vld [vmem:[%s537_s30 + $0x8] sm:$0xff]  ;;  %606 = vmatpush.bf16.msra.mxu0 %v1010_v1  ;;  %v1011_v4 = vld [vmem:[%s537_s30] sm:$0xff]  ;;  %s1348_s18 = sld [smem:[#allocation11_spill]] (!%p1003_p8) }
  0x23   : > { %637 = vmatpush.bf16.msra.mxu1 %v1012_v2  ;;  %v1259_v5 = vld [vmem:[%s520_s14] sm:$0xf]  ;;  %v1014_v18 = vld [vmem:[%s1242_s16 + $0x8] sm:$0xff]  ;;  %s1349_s13 = sld [smem:[#allocation12_spill]] (!%p1003_p8) }
  0x24   : > { %v565_v6 = vld [vmem:[%s524_s17] sm:$0xf]  ;;  %665 = vmatpush.bf16.msra.mxu2 %v1014_v18 }
  0x25   : > { %v1058_v7 = vld [vmem:[%s540_s0] ss:$0 sm:$0xff] }
  0x26   : > { %607 = vmatpush.bf16.msra.mxu0 %v1009_v3  ;;  %v1057_v10 = vld [vmem:[%s1347_s27] ss:$0 sm:$0xff] }
  0x27   : > { %638 = vmatpush.bf16.msra.mxu1 %v1011_v4  ;;  %v1013_v19 = vld [vmem:[%s1242_s16] sm:$0xff] }
  0x28   : > { %666 = vmatpush.bf16.msra.mxu2 %v1013_v19  ;;  %v1059_v24 = vld [vmem:[%s548_s20] ss:$0 sm:$0xff] }
  0x29   : > { %981 = vmatmul.msk.bf16.vlgmr.msra.gmra.mxu0 %vm596_vm1, %v1259_v5  ;;  %v728_v35 = vld [vmem:[%s1252_s2] sm:$0xf] }
  0x2a   : > { %990 = vmatmul.msk.bf16.vlgmr.msra.gmra.mxu1 %vm596_vm1, %v565_v6  ;;  %v735_v36 = vsel %vm711_vm3, %v728_v35, 0  ;;  %v729_v44 = vld [vmem:[#allocation2] sm:$0xff] }
  0x2b   : > { %999 = vmatmul.msk.bf16.vlgmr.msra.gmra.mxu2 %vm596_vm1, %v565_v6  ;;  %744 = vmatpush.bf16.msrb.mxu1 %v735_v36 }
  0xa6   : > { %v609_v8 = vpop.f32.mrf.mxu0 }
  0xa7   : > { %v640_v9 = vpop.f32.mrf.mxu1  ;;  %v610_v13 = vadd.f32 %v1057_v10, %v609_v8 }
  0xa8   : > { %v641_v11 = vadd.f32 %v1058_v7, %v640_v9 }
  0xa9   : > { %v672_v17 = vpack.c.bf16 %v610_v13, %v610_v13 }
  0xaa   : > { %v673_v12 = vpack.c.bf16 %v641_v11, %v641_v11 }
  0xac   : > { %v679_v14 = vsel %vm674_vm2, %v673_v12, 0 }
  0xad   : > { %688 = vmatpush.bf16.xpose.msra.mxu3 %v679_v14 }
  0xae   : > { %v611_v15 = vpop.f32.mrf.mxu0  ;;  %v668_v25 = vpop.f32.mrf.mxu2 }
  0xaf   : > { %v642_v16 = vpop.f32.mrf.mxu1  ;;  %v669_v26 = vadd.f32 %v1059_v24, %v668_v25 }
  0xb1   : > { %v707_v28 = vpack.c.bf16 %v669_v26, %v669_v26 }
  0xb3   : > { %v713_v30 = vsel %vm711_vm3, %v707_v28, 0 }
  0xb4   : > { %1000 = vmatmul.msk.bf16.vlgmr.msra.gmra.mxu3 %vm674_vm2, %v672_v17  ;;  %722 = vmatpush.bf16.msrb.mxu0 %v713_v30 }
  0xb6   : > { %v670_v32 = vpop.f32.mrf.mxu2 }
 0x137   : > { %v690_v20 = vpop.f32.mrf.mxu3 }
 0x138   : > { %v694_v21 = vmul.f32 0.35355338, %v690_v20 }
 0x13a   : > { %v695_v22 = vsel %vm674_vm2, %v694_v21, -inf }
 0x13b   : > { %696 = vmax.xlane.f32.xlu0 %v695_v22 }
 0x13f   : > { %v692_v23 = vpop.f32.mrf.mxu3 }
 0x1ae   : > { %v697_v27 = vpop.xlane.xlu0 %696 }
 0x1af   : > { %v698_v29 = vsub.f32 %v694_v21, %v697_v27 }
 0x1b1   : > { %v699_v31 = vmul.f32 1.442695, %v698_v29 }
 0x1b3   : > { %1060 = vpow2.f32 %v699_v31 }
 0x1b9   : > { %v1061_v33 = vpop.eup %1060 }
 0x1ba   : > { %v701_v34 = vsel %vm674_vm2, %v1061_v33, 0.0 }
 0x1bb   : > { %702 = vadd.xlane.f32.xlu0 %v701_v34 }
 0x22e   : > { %v703_v37 = vpop.xlane.xlu0 %702 }
 0x22f   : > { %1062 = vrcp.f32 %v703_v37 }
 0x235   : > { %v1063_v38 = vpop.eup %1062 }
 0x236   : > { %v705_v39 = vmul.f32 %v1063_v38, %v1061_v33 }
 0x238   : > { %v706_v40 = vpack.c.bf16 %v705_v39, %v705_v39 }
 0x23a   : > { %1001 = vmatmul.msk.bf16.vlgmr.msrb.gmra.mxu0 %vm674_vm2, %v706_v40 }
 0x2b7   : > { %v724_v41 = vpop.f32.mrf.mxu0 }
 0x2b8   : > { %v730_v42 = vpack.c.bf16 %v724_v41, %v724_v41 }
 0x2ba   : > { %1002 = vmatmul.msk.bf16.vlgmr.msrb.gmra.mxu1 %vm674_vm2, %v730_v42 }
 0x2bf   : > { %v726_v43 = vpop.f32.mrf.mxu0 }
 0x337   : > { %v746_v45 = vpop.f32.mrf.mxu1 }
 0x338   : > { %v750_v46 = vadd.f32 %v746_v45, %v729_v44 }
 0x33a   : > { %751 = vst.msk [vmem:[#allocation2] sm:$0xff] %vm596_vm1, %v750_v46 }
 0x33b   : > { %755 = sbr.rel (%p1003_p8) target bundleno = 1109 (0x455), region = 76 }
 0x33f   : > { %v748_v47 = vpop.f32.mrf.mxu1 }
 0x340   : > { %v1064_v49 = vld [vmem:[%s1327_s9] ss:$0 sm:$0xff]  ;;  %v762_v50 = vunpack.c.l.bf16 %v1259_v5  ;;  %v1112_v54 = vmov 32.0   ;;  %vm804_vm8 = vcmask 257024  }
 0x341   : > { %v756_v48 = vld [vmem:[#allocation2] sm:$0xff]  ;;  %1067 = vrcp.f32 %v1112_v54 }
 0x342   : > { %v761_v51 = vadd.f32 %v1064_v49, %v756_v48  ;;  %v1065_v11 = vld [vmem:[%s1348_s18] ss:$0 sm:$0xff] }
 0x343   : > { %v1066_v13 = vld [vmem:[%s1349_s13] ss:$0 sm:$0xff] }
 0x344   : > { %v763_v52 = vadd.f32 %v762_v50, %v761_v51 }
 0x346   : > { %v766_v53 = vsel %vm596_vm1, %v763_v52, 0.0 }
 0x347   : > { %767 = vadd.xlane.f32.xlu0 %v766_v53  ;;  %v1068_v55 = vpop.eup %1067 }
 0x348   : > { %v770_v56 = vmul.f32 32.0, %v1068_v55  ;;  %vm774_vm4 = vweird.f32 %v1068_v55 }
 0x34a   : > { %v771_v57 = vsub.f32 1.0, %v770_v56 }
 0x34c   : > { %v772_v58 = vmul.f32 %v1068_v55, %v771_v57 }
 0x34e   : > { %v773_v59 = vadd.f32 %v1068_v55, %v772_v58 }
 0x350   : > { %v775_v60 = vsel %vm774_vm4, %v1068_v55, %v773_v59 }
 0x3ba   : > { %v768_v61 = vpop.xlane.xlu0 %767 }
 0x3bb   : > { %v776_v62 = vmul.f32 %v775_v60, %v768_v61 }
 0x3bd   : > { %v777_v63 = vsub.f32 %v763_v52, %v776_v62 }
 0x3bf   : > { %v778_v0 = vmul.f32 %v777_v63, %v777_v63 }
 0x3c1   : > { %v779_v1 = vsel %vm596_vm1, %v778_v0, 0.0 }
 0x3c2   : > { %780 = vadd.xlane.f32.xlu0 %v779_v1 }
 0x435   : > { %v781_v2 = vpop.xlane.xlu0 %780 }
 0x436   : > { %v782_v3 = vmul.f32 %v781_v2, %v775_v60 }
 0x438   : > { %v783_v4 = vadd.f32 1e-05, %v782_v3 }
 0x43a   : > { %1069 = vrsqrt.f32 %v783_v4  ;;  %vm790_vm6 = vweird.f32 %v783_v4 }
 0x440   : > { %v1070_v5 = vpop.eup %1069 }
 0x441   : > { %v785_v6 = vmul.f32 %v1070_v5, %v783_v4  ;;  %vm791_vm5 = vweird.f32 %v1070_v5 }
 0x442   : > { %vm792_vm7 = vmor %vm790_vm6, %vm791_vm5 }
 0x443   : > { %v786_v7 = vmul.f32 %v1070_v5, %v785_v6 }
 0x445   : > { %v787_v8 = vmul.f32 0.5, %v786_v7 }
 0x447   : > { %v788_v9 = vsub.f32 1.5, %v787_v8 }
 0x449   : > { %v789_v10 = vmul.f32 %v1070_v5, %v788_v9 }
 0x44b   : > { %v793_v12 = vsel %vm792_vm7, %v1070_v5, %v789_v10 }
 0x44c   : > { %v794_v14 = vmul.f32 %v793_v12, %v777_v63 }
 0x44e   : > { %v798_v15 = vmul.f32 %v1065_v11, %v794_v14 }
 0x450   : > { %v802_v16 = vadd.f32 %v1066_v13, %v798_v15 }
 0x452   : > { %v803_v17 = vpack.c.bf16 %v802_v16, %v802_v16 }
 0x454   : > { %805 = vst.msk [vmem:[%s556_s11] sm:$0xf] %vm804_vm8, %v803_v17 }
 0x455 PF: > { %s1350_s19 = sld [smem:[#allocation5_spill]] }
 0x456   : > { %s1351_s21 = sld [smem:[#allocation3_spill]] }
 0x457   : > { %s1352_s22 = sld [smem:[#allocation4_spill]] }
 0x458   : > { %s1353_s23 = sld [smem:[#allocation6_spill]] }
 0x459   : > { %s1354_s24 = sld [smem:[#allocation7_spill]] }
 0x45b   : > { %s22_s25 = sadd.s32 1, %s1350_s19  }
 0x45c   : > { %p19_p9 = scmp.ge.s32.totalorder %s22_s25, 10  }
 0x45e   :  { %21 = sbr.rel (!%p19_p9) target bundleno = 6 (0x6), region = 130 }

</bundles_post_ra>
